<compile_context>
chip_gen: v5e
topology: v5e:2x2
jax: 0.10.0
libtpu: 0.0.40
codegen_flags: <defaults>
</compile_context>

<pallas_src>
import functools

import jax
import jax.numpy as jnp
from jax import lax
from jax.experimental import pallas as pl
from jax.experimental.pallas import tpu as pltpu


def attn_word_rnn_kernel(T, B, H,
                         x_ref,          # (T*B, 2E)  [x(t) | x(T-1-t)] merged slab
                         wih_ref,        # (2E, 8H)   block-structured fwd+bwd input weights
                         whh_ref,        # (2H, 8H)   block-diagonal recurrent weights
                         b_ref,          # (1, 8H)    fused biases (gate order i,f,o,g; fwd/bwd interleaved)
                         wproj_ref,      # (2H, 2H)
                         bproj_ref,      # (1, 2H)
                         wctx_ref,       # (1, 2H)
                         vec_ref,        # (B, 2H)    word_attn_vectors
                         hn_ref,         # (2, B, H)  h_n
                         cn_ref,         # (2, B, H)  c_n
                         attn_ref):      # (B, T)     word_attn_norm
    H2 = 2 * H
    H4 = 4 * H
    H6 = 6 * H

    # ---- One-shot fused input projection for both directions AND both time
    # orders (the merged input slab already pairs x(t) with x(T-1-t)); bias folded.
    gx_all = (jnp.dot(x_ref[...], wih_ref[...],
                      preferred_element_type=jnp.float32)
              + b_ref[...])                                   # (T*B, 8H)

    whh = whh_ref[...]                                        # (2H, 8H) held across the loop

    # Packed state [h_f | h_b], [c_f | c_b].
    h = jnp.zeros((B, H2), jnp.float32)
    c = jnp.zeros((B, H2), jnp.float32)

    hs_fwd = [None] * T
    hs_bwd = [None] * T

    # ---- Interleaved bidirectional recurrence, fully unrolled (T small, static).
    for s in range(T):
        gx = gx_all[s * B:(s + 1) * B, :]                     # (B, 8H) static slice
        gates = gx + jnp.dot(h, whh, preferred_element_type=jnp.float32)

        # Sigmoid only on [i|f|o] (6H), tanh only on [g] (2H).
        sg = jax.nn.sigmoid(gates[:, 0:H6])
        g_cat = jnp.tanh(gates[:, H6:])
        i_cat = sg[:, 0:H2]
        f_cat = sg[:, H2:H4]
        o_cat = sg[:, H4:H6]

        c = f_cat * c + i_cat * g_cat
        h = o_cat * jnp.tanh(c)

        # Register-resident outputs (no VMEM stores inside the recurrence).
        hs_fwd[s] = h[:, 0:H]
        hs_bwd[T - 1 - s] = h[:, H:H2]

    # Final states: after the last step h/c hold (fwd @ t=T-1, bwd @ t=0).
    hn_ref[0] = h[:, 0:H]
    hn_ref[1] = h[:, H:H2]
    cn_ref[0] = c[:, 0:H]
    cn_ref[1] = c[:, H:H2]

    # ---- Attention epilogue (all trace-time assembled, lane-dense slab). ----
    out_t = [jnp.concatenate([hs_fwd[t], hs_bwd[t]], axis=1) for t in range(T)]
    out_flat = jnp.concatenate(out_t, axis=0)                 # (T*B, 2H), t-major

    # word_squish = tanh(word_project_fc(output_word))
    squish = jnp.tanh(
        jnp.dot(out_flat, wproj_ref[...], preferred_element_type=jnp.float32)
        + bproj_ref[...])                                     # (T*B, 2H)

    # word_attn = word_context_fc(word_squish): N=1 matmul -> VPU mul + lane reduce.
    logits_rows = jnp.sum(squish * wctx_ref[...], axis=-1, keepdims=True)  # (T*B, 1)
    logits = jnp.concatenate(
        [logits_rows[t * B:(t + 1) * B, :] for t in range(T)], axis=1)     # (B, T)

    # softmax over the sequence dimension (dim=1 in PyTorch).
    m = jnp.max(logits, axis=1, keepdims=True)
    e = jnp.exp(logits - m)
    attn = e * pl.reciprocal(jnp.sum(e, axis=1, keepdims=True), approx=True)  # (B, T)
    attn_ref[...] = attn

    # word_attn_vectors = (output_word * attn).sum(seq)
    vec = jnp.zeros((B, H2), jnp.float32)
    for t in range(T):
        vec = vec + out_t[t] * attn[:, t:t + 1]
    vec_ref[...] = vec


# PyTorch gate layout is [i, f, g, o]; we emit [i, f, o, g] (sigmoid gates first).
_GATE_ORDER = (0, 1, 3, 2)


def _gate_major_interleave(mat_f, mat_b, H, axis):
    """Interleave per-gate H-wide chunks of two matrices: [i_f,i_b,f_f,f_b,o_f,o_b,g_f,g_b]."""
    chunks = []
    for g in _GATE_ORDER:
        chunks.append(lax.slice_in_dim(mat_f, g * H, (g + 1) * H, axis=axis))
        chunks.append(lax.slice_in_dim(mat_b, g * H, (g + 1) * H, axis=axis))
    return jnp.concatenate(chunks, axis=axis)


def attention_word_rnn_v2(tokens, params):
    """Wrapper: embedding lookup + weight/input repacking (layout plumbing) + one Pallas call."""
    embed_w = params["embed"]
    B, T = tokens.shape
    E = embed_w.shape[1]
    H = params["w_hh_f"].shape[1]

    # Embedding lookup stays in XLA (data-dependent gather); time-major layout.
    x_tm = jnp.transpose(embed_w[tokens].astype(jnp.float32), (1, 0, 2))   # (T, B, E)
    x_fwd = x_tm.reshape(T * B, E)                                          # rows t-major, b-minor
    x_bwd = x_tm[::-1].reshape(T * B, E)                                    # time-reversed rows
    x_merged = jnp.concatenate([x_fwd, x_bwd], axis=1)                      # (T*B, 2E)

    # Block-structured input weights: rows 0:E drive forward gate columns,
    # rows E:2E drive backward gate columns -> one matmul yields merged gx.
    wihT_f = params["w_ih_f"].T.astype(jnp.float32)                         # (E, 4H)
    wihT_b = params["w_ih_b"].T.astype(jnp.float32)
    zE = jnp.zeros((E, 4 * H), jnp.float32)
    wih_merged = jnp.concatenate(
        [_gate_major_interleave(wihT_f, zE, H, axis=1),
         _gate_major_interleave(zE, wihT_b, H, axis=1)], axis=0)            # (2E, 8H)

    # Block-diagonal recurrent weights: rows 0:H = h_f, rows H:2H = h_b.
    whhT_f = params["w_hh_f"].T.astype(jnp.float32)                         # (H, 4H)
    whhT_b = params["w_hh_b"].T.astype(jnp.float32)
    zH = jnp.zeros((H, 4 * H), jnp.float32)
    whh_merged = jnp.concatenate(
        [_gate_major_interleave(whhT_f, zH, H, axis=1),
         _gate_major_interleave(zH, whhT_b, H, axis=1)], axis=0)            # (2H, 8H)

    # Fused biases (b_ih + b_hh per direction), gate-major interleaved.
    b_f = (params["b_ih_f"] + params["b_hh_f"]).astype(jnp.float32)[None, :]
    b_b = (params["b_ih_b"] + params["b_hh_b"]).astype(jnp.float32)[None, :]
    b_cat = _gate_major_interleave(b_f, b_b, H, axis=1)                     # (1, 8H)

    wproj = params["w_proj"].T.astype(jnp.float32)            # (2H, 2H)
    bproj = params["b_proj"].astype(jnp.float32)[None, :]     # (1, 2H)
    wctx = params["w_ctx"].astype(jnp.float32)                # (1, 2H)

    kernel = functools.partial(attn_word_rnn_kernel, T, B, H)
    vmem = pl.BlockSpec(memory_space=pltpu.MemorySpace.VMEM)

    out_shape = (
        jax.ShapeDtypeStruct((B, 2 * H), jnp.float32),   # word_attn_vectors
        jax.ShapeDtypeStruct((2, B, H), jnp.float32),    # h_n
        jax.ShapeDtypeStruct((2, B, H), jnp.float32),    # c_n
        jax.ShapeDtypeStruct((B, T), jnp.float32),       # word_attn_norm
    )

    vec, h_n, c_n, attn_norm = pl.pallas_call(
        kernel,
        out_shape=out_shape,
        in_specs=[vmem] * 7,
        out_specs=(vmem, vmem, vmem, vmem),
    )(x_merged, wih_merged, whh_merged, b_cat, wproj, bproj, wctx)

    return vec, (h_n, c_n), attn_norm


def reference(tokens, params):
    """Pure-JAX reference mirroring the PyTorch forward."""
    embed_w = params["embed"]
    B, T = tokens.shape
    H = params["w_hh_f"].shape[1]
    x = embed_w[tokens].astype(jnp.float32)              # (B, T, E)
    xs = jnp.transpose(x, (1, 0, 2))                     # (T, B, E)

    def run_dir(w_ih, w_hh, b_ih, b_hh, reverse):
        seq = xs[::-1] if reverse else xs

        def step(carry, x_t):
            h, c = carry
            gates = x_t @ w_ih.T + b_ih + h @ w_hh.T + b_hh
            i, f, g, o = jnp.split(gates, 4, axis=-1)
            i, f, o = jax.nn.sigmoid(i), jax.nn.sigmoid(f), jax.nn.sigmoid(o)
            g = jnp.tanh(g)
            c = f * c + i * g
            h = o * jnp.tanh(c)
            return (h, c), h

        (hn, cn), hs = lax.scan(
            step, (jnp.zeros((B, H)), jnp.zeros((B, H))), seq)
        if reverse:
            hs = hs[::-1]
        return hn, cn, hs

    hf_n, cf_n, hf = run_dir(params["w_ih_f"], params["w_hh_f"],
                             params["b_ih_f"], params["b_hh_f"], False)
    hb_n, cb_n, hb = run_dir(params["w_ih_b"], params["w_hh_b"],
                             params["b_ih_b"], params["b_hh_b"], True)

    out = jnp.concatenate([hf, hb], axis=-1)             # (T, B, 2H)
    out_btd = jnp.transpose(out, (1, 0, 2))              # (B, T, 2H)
    squish = jnp.tanh(out_btd @ params["w_proj"].T + params["b_proj"])
    attn = (squish @ params["w_ctx"].T)[..., 0]          # (B, T)
    attn_norm = jax.nn.softmax(attn, axis=1)
    vec = jnp.sum(out_btd * attn_norm[:, :, None], axis=1)
    h_n = jnp.stack([hf_n, hb_n], axis=0)
    c_n = jnp.stack([cf_n, cb_n], axis=0)
    return vec, (h_n, c_n), attn_norm


if __name__ == "__main__":
    # Small, module-consistent shapes.
    num_tokens, E, H = 50, 32, 32   # embed_size=32, word_gru_hidden=32, bidirectional
    B, T = 2, 8

    key = jax.random.PRNGKey(0)
    ks = jax.random.split(key, 14)
    kstd = 1.0 / jnp.sqrt(H)
    u = lambda k, shape, r: jax.random.uniform(k, shape, jnp.float32, -r, r)

    params = {
        "embed":  u(ks[0], (num_tokens, E), 0.1),        # init_weights: uniform(-0.1, 0.1)
        "w_ih_f": u(ks[1], (4 * H, E), kstd),
        "w_hh_f": u(ks[2], (4 * H, H), kstd),
        "b_ih_f": u(ks[3], (4 * H,), kstd),
        "b_hh_f": u(ks[4], (4 * H,), kstd),
        "w_ih_b": u(ks[5], (4 * H, E), kstd),
        "w_hh_b": u(ks[6], (4 * H, H), kstd),
        "b_ih_b": u(ks[7], (4 * H,), kstd),
        "b_hh_b": u(ks[8], (4 * H,), kstd),
        "w_proj": u(ks[9], (2 * H, 2 * H), 1.0 / jnp.sqrt(2 * H)),
        "b_proj": u(ks[10], (2 * H,), 1.0 / jnp.sqrt(2 * H)),
        "w_ctx":  u(ks[11], (1, 2 * H), 1.0 / jnp.sqrt(2 * H)),
    }
    tokens = jax.random.randint(ks[12], (B, T), 0, num_tokens, dtype=jnp.int32)

    vec, (h_n, c_n), attn_norm = attention_word_rnn_v2(tokens, params)
    jax.block_until_ready((vec, h_n, c_n, attn_norm))

    rvec, (rh_n, rc_n), rattn = reference(tokens, params)
    assert jnp.allclose(vec, rvec, atol=1e-3, rtol=1e-3)
    assert jnp.allclose(h_n, rh_n, atol=1e-3, rtol=1e-3)
    assert jnp.allclose(c_n, rc_n, atol=1e-3, rtol=1e-3)
    assert jnp.allclose(attn_norm, rattn, atol=1e-3, rtol=1e-3)
    assert vec.shape == (B, 2 * H) and attn_norm.shape == (B, T)
    assert h_n.shape == (2, B, H) and c_n.shape == (2, B, H)

    print("KERNEL_OK")
</pallas_src>

<mosaic_0001>
module attributes {stable_mosaic.version = 11 : i64} {
  func.func @attn_word_rnn_kernel(%arg0: memref<16x64xf32, #tpu.memory_space<vmem>>, %arg1: memref<64x256xf32, #tpu.memory_space<vmem>>, %arg2: memref<64x256xf32, #tpu.memory_space<vmem>>, %arg3: memref<1x256xf32, #tpu.memory_space<vmem>>, %arg4: memref<64x64xf32, #tpu.memory_space<vmem>>, %arg5: memref<1x64xf32, #tpu.memory_space<vmem>>, %arg6: memref<1x64xf32, #tpu.memory_space<vmem>>, %arg7: memref<2x64xf32, #tpu.memory_space<vmem>>, %arg8: memref<2x2x32xf32, #tpu.memory_space<vmem>>, %arg9: memref<2x2x32xf32, #tpu.memory_space<vmem>>, %arg10: memref<2x8xf32, #tpu.memory_space<vmem>>) attributes {dimension_semantics = [], scalar_prefetch = 0 : i64, scratch_operands = 0 : i64, tpu.core_type = #tpu.core_type<tc>} {
    %c0 = arith.constant 0 : index
    %c0_0 = arith.constant 0 : index
    %0 = vector.load %arg0[%c0, %c0_0] : memref<16x64xf32, #tpu.memory_space<vmem>>, vector<16x64xf32>
    %c0_1 = arith.constant 0 : index
    %c0_2 = arith.constant 0 : index
    %1 = vector.load %arg1[%c0_1, %c0_2] : memref<64x256xf32, #tpu.memory_space<vmem>>, vector<64x256xf32>
    %cst = arith.constant dense<0.000000e+00> : vector<16x256xf32>
    %2 = tpu.matmul %0, %1, %cst {dimension_numbers = #tpu.dot_dimension_numbers<[1], [0], [0], [1], [0, 0, 1, 1], [], []>} : vector<16x64xf32>, vector<64x256xf32>, vector<16x256xf32> -> vector<16x256xf32>
    %c0_3 = arith.constant 0 : index
    %c0_4 = arith.constant 0 : index
    %3 = vector.load %arg3[%c0_3, %c0_4] : memref<1x256xf32, #tpu.memory_space<vmem>>, vector<1x256xf32>
    %4 = vector.broadcast %3 : vector<1x256xf32> to vector<16x256xf32>
    %5 = arith.addf %2, %4 : vector<16x256xf32>
    %c0_5 = arith.constant 0 : index
    %c0_6 = arith.constant 0 : index
    %6 = vector.load %arg2[%c0_5, %c0_6] : memref<64x256xf32, #tpu.memory_space<vmem>>, vector<64x256xf32>
    %cst_7 = arith.constant 0.000000e+00 : f32
    %7 = vector.broadcast %cst_7 : f32 to vector<2x64xf32>
    %cst_8 = arith.constant 0.000000e+00 : f32
    %8 = vector.broadcast %cst_8 : f32 to vector<2x64xf32>
    %9 = vector.extract_strided_slice %5 {offsets = [0, 0], sizes = [2, 256], strides = [1, 1]} : vector<16x256xf32> to vector<2x256xf32>
    %cst_9 = arith.constant dense<0.000000e+00> : vector<2x256xf32>
    %10 = tpu.matmul %7, %6, %cst_9 {dimension_numbers = #tpu.dot_dimension_numbers<[1], [0], [0], [1], [0, 0, 1, 1], [], []>} : vector<2x64xf32>, vector<64x256xf32>, vector<2x256xf32> -> vector<2x256xf32>
    %11 = arith.addf %9, %10 : vector<2x256xf32>
    %12 = vector.extract_strided_slice %11 {offsets = [0, 0], sizes = [2, 192], strides = [1, 1]} : vector<2x256xf32> to vector<2x192xf32>
    %13 = arith.negf %12 : vector<2x192xf32>
    %14 = math.exp %13 : vector<2x192xf32>
    %cst_10 = arith.constant 1.000000e+00 : f32
    %15 = vector.broadcast %cst_10 : f32 to vector<2x192xf32>
    %16 = arith.addf %15, %14 : vector<2x192xf32>
    %17 = arith.divf %15, %16 : vector<2x192xf32>
    %18 = vector.extract_strided_slice %11 {offsets = [0, 192], sizes = [2, 64], strides = [1, 1]} : vector<2x256xf32> to vector<2x64xf32>
    %19 = math.tanh %18 : vector<2x64xf32>
    %20 = vector.extract_strided_slice %17 {offsets = [0, 0], sizes = [2, 64], strides = [1, 1]} : vector<2x192xf32> to vector<2x64xf32>
    %21 = vector.extract_strided_slice %17 {offsets = [0, 64], sizes = [2, 64], strides = [1, 1]} : vector<2x192xf32> to vector<2x64xf32>
    %22 = vector.extract_strided_slice %17 {offsets = [0, 128], sizes = [2, 64], strides = [1, 1]} : vector<2x192xf32> to vector<2x64xf32>
    %23 = arith.mulf %21, %8 : vector<2x64xf32>
    %24 = arith.mulf %20, %19 : vector<2x64xf32>
    %25 = arith.addf %23, %24 : vector<2x64xf32>
    %26 = math.tanh %25 : vector<2x64xf32>
    %27 = arith.mulf %22, %26 : vector<2x64xf32>
    %28 = vector.extract_strided_slice %27 {offsets = [0, 0], sizes = [2, 32], strides = [1, 1]} : vector<2x64xf32> to vector<2x32xf32>
    %29 = vector.extract_strided_slice %27 {offsets = [0, 32], sizes = [2, 32], strides = [1, 1]} : vector<2x64xf32> to vector<2x32xf32>
    %30 = vector.extract_strided_slice %5 {offsets = [2, 0], sizes = [2, 256], strides = [1, 1]} : vector<16x256xf32> to vector<2x256xf32>
    %cst_11 = arith.constant dense<0.000000e+00> : vector<2x256xf32>
    %31 = tpu.matmul %27, %6, %cst_11 {dimension_numbers = #tpu.dot_dimension_numbers<[1], [0], [0], [1], [0, 0, 1, 1], [], []>} : vector<2x64xf32>, vector<64x256xf32>, vector<2x256xf32> -> vector<2x256xf32>
    %32 = arith.addf %30, %31 : vector<2x256xf32>
    %33 = vector.extract_strided_slice %32 {offsets = [0, 0], sizes = [2, 192], strides = [1, 1]} : vector<2x256xf32> to vector<2x192xf32>
    %34 = arith.negf %33 : vector<2x192xf32>
    %35 = math.exp %34 : vector<2x192xf32>
    %cst_12 = arith.constant 1.000000e+00 : f32
    %36 = vector.broadcast %cst_12 : f32 to vector<2x192xf32>
    %37 = arith.addf %36, %35 : vector<2x192xf32>
    %38 = arith.divf %36, %37 : vector<2x192xf32>
    %39 = vector.extract_strided_slice %32 {offsets = [0, 192], sizes = [2, 64], strides = [1, 1]} : vector<2x256xf32> to vector<2x64xf32>
    %40 = math.tanh %39 : vector<2x64xf32>
    %41 = vector.extract_strided_slice %38 {offsets = [0, 0], sizes = [2, 64], strides = [1, 1]} : vector<2x192xf32> to vector<2x64xf32>
    %42 = vector.extract_strided_slice %38 {offsets = [0, 64], sizes = [2, 64], strides = [1, 1]} : vector<2x192xf32> to vector<2x64xf32>
    %43 = vector.extract_strided_slice %38 {offsets = [0, 128], sizes = [2, 64], strides = [1, 1]} : vector<2x192xf32> to vector<2x64xf32>
    %44 = arith.mulf %42, %25 : vector<2x64xf32>
    %45 = arith.mulf %41, %40 : vector<2x64xf32>
    %46 = arith.addf %44, %45 : vector<2x64xf32>
    %47 = math.tanh %46 : vector<2x64xf32>
    %48 = arith.mulf %43, %47 : vector<2x64xf32>
    %49 = vector.extract_strided_slice %48 {offsets = [0, 0], sizes = [2, 32], strides = [1, 1]} : vector<2x64xf32> to vector<2x32xf32>
    %50 = vector.extract_strided_slice %48 {offsets = [0, 32], sizes = [2, 32], strides = [1, 1]} : vector<2x64xf32> to vector<2x32xf32>
    %51 = vector.extract_strided_slice %5 {offsets = [4, 0], sizes = [2, 256], strides = [1, 1]} : vector<16x256xf32> to vector<2x256xf32>
    %cst_13 = arith.constant dense<0.000000e+00> : vector<2x256xf32>
    %52 = tpu.matmul %48, %6, %cst_13 {dimension_numbers = #tpu.dot_dimension_numbers<[1], [0], [0], [1], [0, 0, 1, 1], [], []>} : vector<2x64xf32>, vector<64x256xf32>, vector<2x256xf32> -> vector<2x256xf32>
    %53 = arith.addf %51, %52 : vector<2x256xf32>
    %54 = vector.extract_strided_slice %53 {offsets = [0, 0], sizes = [2, 192], strides = [1, 1]} : vector<2x256xf32> to vector<2x192xf32>
    %55 = arith.negf %54 : vector<2x192xf32>
    %56 = math.exp %55 : vector<2x192xf32>
    %cst_14 = arith.constant 1.000000e+00 : f32
    %57 = vector.broadcast %cst_14 : f32 to vector<2x192xf32>
    %58 = arith.addf %57, %56 : vector<2x192xf32>
    %59 = arith.divf %57, %58 : vector<2x192xf32>
    %60 = vector.extract_strided_slice %53 {offsets = [0, 192], sizes = [2, 64], strides = [1, 1]} : vector<2x256xf32> to vector<2x64xf32>
    %61 = math.tanh %60 : vector<2x64xf32>
    %62 = vector.extract_strided_slice %59 {offsets = [0, 0], sizes = [2, 64], strides = [1, 1]} : vector<2x192xf32> to vector<2x64xf32>
    %63 = vector.extract_strided_slice %59 {offsets = [0, 64], sizes = [2, 64], strides = [1, 1]} : vector<2x192xf32> to vector<2x64xf32>
    %64 = vector.extract_strided_slice %59 {offsets = [0, 128], sizes = [2, 64], strides = [1, 1]} : vector<2x192xf32> to vector<2x64xf32>
    %65 = arith.mulf %63, %46 : vector<2x64xf32>
    %66 = arith.mulf %62, %61 : vector<2x64xf32>
    %67 = arith.addf %65, %66 : vector<2x64xf32>
    %68 = math.tanh %67 : vector<2x64xf32>
    %69 = arith.mulf %64, %68 : vector<2x64xf32>
    %70 = vector.extract_strided_slice %69 {offsets = [0, 0], sizes = [2, 32], strides = [1, 1]} : vector<2x64xf32> to vector<2x32xf32>
    %71 = vector.extract_strided_slice %69 {offsets = [0, 32], sizes = [2, 32], strides = [1, 1]} : vector<2x64xf32> to vector<2x32xf32>
    %72 = vector.extract_strided_slice %5 {offsets = [6, 0], sizes = [2, 256], strides = [1, 1]} : vector<16x256xf32> to vector<2x256xf32>
    %cst_15 = arith.constant dense<0.000000e+00> : vector<2x256xf32>
    %73 = tpu.matmul %69, %6, %cst_15 {dimension_numbers = #tpu.dot_dimension_numbers<[1], [0], [0], [1], [0, 0, 1, 1], [], []>} : vector<2x64xf32>, vector<64x256xf32>, vector<2x256xf32> -> vector<2x256xf32>
    %74 = arith.addf %72, %73 : vector<2x256xf32>
    %75 = vector.extract_strided_slice %74 {offsets = [0, 0], sizes = [2, 192], strides = [1, 1]} : vector<2x256xf32> to vector<2x192xf32>
    %76 = arith.negf %75 : vector<2x192xf32>
    %77 = math.exp %76 : vector<2x192xf32>
    %cst_16 = arith.constant 1.000000e+00 : f32
    %78 = vector.broadcast %cst_16 : f32 to vector<2x192xf32>
    %79 = arith.addf %78, %77 : vector<2x192xf32>
    %80 = arith.divf %78, %79 : vector<2x192xf32>
    %81 = vector.extract_strided_slice %74 {offsets = [0, 192], sizes = [2, 64], strides = [1, 1]} : vector<2x256xf32> to vector<2x64xf32>
    %82 = math.tanh %81 : vector<2x64xf32>
    %83 = vector.extract_strided_slice %80 {offsets = [0, 0], sizes = [2, 64], strides = [1, 1]} : vector<2x192xf32> to vector<2x64xf32>
    %84 = vector.extract_strided_slice %80 {offsets = [0, 64], sizes = [2, 64], strides = [1, 1]} : vector<2x192xf32> to vector<2x64xf32>
    %85 = vector.extract_strided_slice %80 {offsets = [0, 128], sizes = [2, 64], strides = [1, 1]} : vector<2x192xf32> to vector<2x64xf32>
    %86 = arith.mulf %84, %67 : vector<2x64xf32>
    %87 = arith.mulf %83, %82 : vector<2x64xf32>
    %88 = arith.addf %86, %87 : vector<2x64xf32>
    %89 = math.tanh %88 : vector<2x64xf32>
    %90 = arith.mulf %85, %89 : vector<2x64xf32>
    %91 = vector.extract_strided_slice %90 {offsets = [0, 0], sizes = [2, 32], strides = [1, 1]} : vector<2x64xf32> to vector<2x32xf32>
    %92 = vector.extract_strided_slice %90 {offsets = [0, 32], sizes = [2, 32], strides = [1, 1]} : vector<2x64xf32> to vector<2x32xf32>
    %93 = vector.extract_strided_slice %5 {offsets = [8, 0], sizes = [2, 256], strides = [1, 1]} : vector<16x256xf32> to vector<2x256xf32>
    %cst_17 = arith.constant dense<0.000000e+00> : vector<2x256xf32>
    %94 = tpu.matmul %90, %6, %cst_17 {dimension_numbers = #tpu.dot_dimension_numbers<[1], [0], [0], [1], [0, 0, 1, 1], [], []>} : vector<2x64xf32>, vector<64x256xf32>, vector<2x256xf32> -> vector<2x256xf32>
    %95 = arith.addf %93, %94 : vector<2x256xf32>
    %96 = vector.extract_strided_slice %95 {offsets = [0, 0], sizes = [2, 192], strides = [1, 1]} : vector<2x256xf32> to vector<2x192xf32>
    %97 = arith.negf %96 : vector<2x192xf32>
    %98 = math.exp %97 : vector<2x192xf32>
    %cst_18 = arith.constant 1.000000e+00 : f32
    %99 = vector.broadcast %cst_18 : f32 to vector<2x192xf32>
    %100 = arith.addf %99, %98 : vector<2x192xf32>
    %101 = arith.divf %99, %100 : vector<2x192xf32>
    %102 = vector.extract_strided_slice %95 {offsets = [0, 192], sizes = [2, 64], strides = [1, 1]} : vector<2x256xf32> to vector<2x64xf32>
    %103 = math.tanh %102 : vector<2x64xf32>
    %104 = vector.extract_strided_slice %101 {offsets = [0, 0], sizes = [2, 64], strides = [1, 1]} : vector<2x192xf32> to vector<2x64xf32>
    %105 = vector.extract_strided_slice %101 {offsets = [0, 64], sizes = [2, 64], strides = [1, 1]} : vector<2x192xf32> to vector<2x64xf32>
    %106 = vector.extract_strided_slice %101 {offsets = [0, 128], sizes = [2, 64], strides = [1, 1]} : vector<2x192xf32> to vector<2x64xf32>
    %107 = arith.mulf %105, %88 : vector<2x64xf32>
    %108 = arith.mulf %104, %103 : vector<2x64xf32>
    %109 = arith.addf %107, %108 : vector<2x64xf32>
    %110 = math.tanh %109 : vector<2x64xf32>
    %111 = arith.mulf %106, %110 : vector<2x64xf32>
    %112 = vector.extract_strided_slice %111 {offsets = [0, 0], sizes = [2, 32], strides = [1, 1]} : vector<2x64xf32> to vector<2x32xf32>
    %113 = vector.extract_strided_slice %111 {offsets = [0, 32], sizes = [2, 32], strides = [1, 1]} : vector<2x64xf32> to vector<2x32xf32>
    %114 = vector.extract_strided_slice %5 {offsets = [10, 0], sizes = [2, 256], strides = [1, 1]} : vector<16x256xf32> to vector<2x256xf32>
    %cst_19 = arith.constant dense<0.000000e+00> : vector<2x256xf32>
    %115 = tpu.matmul %111, %6, %cst_19 {dimension_numbers = #tpu.dot_dimension_numbers<[1], [0], [0], [1], [0, 0, 1, 1], [], []>} : vector<2x64xf32>, vector<64x256xf32>, vector<2x256xf32> -> vector<2x256xf32>
    %116 = arith.addf %114, %115 : vector<2x256xf32>
    %117 = vector.extract_strided_slice %116 {offsets = [0, 0], sizes = [2, 192], strides = [1, 1]} : vector<2x256xf32> to vector<2x192xf32>
    %118 = arith.negf %117 : vector<2x192xf32>
    %119 = math.exp %118 : vector<2x192xf32>
    %cst_20 = arith.constant 1.000000e+00 : f32
    %120 = vector.broadcast %cst_20 : f32 to vector<2x192xf32>
    %121 = arith.addf %120, %119 : vector<2x192xf32>
    %122 = arith.divf %120, %121 : vector<2x192xf32>
    %123 = vector.extract_strided_slice %116 {offsets = [0, 192], sizes = [2, 64], strides = [1, 1]} : vector<2x256xf32> to vector<2x64xf32>
    %124 = math.tanh %123 : vector<2x64xf32>
    %125 = vector.extract_strided_slice %122 {offsets = [0, 0], sizes = [2, 64], strides = [1, 1]} : vector<2x192xf32> to vector<2x64xf32>
    %126 = vector.extract_strided_slice %122 {offsets = [0, 64], sizes = [2, 64], strides = [1, 1]} : vector<2x192xf32> to vector<2x64xf32>
    %127 = vector.extract_strided_slice %122 {offsets = [0, 128], sizes = [2, 64], strides = [1, 1]} : vector<2x192xf32> to vector<2x64xf32>
    %128 = arith.mulf %126, %109 : vector<2x64xf32>
    %129 = arith.mulf %125, %124 : vector<2x64xf32>
    %130 = arith.addf %128, %129 : vector<2x64xf32>
    %131 = math.tanh %130 : vector<2x64xf32>
    %132 = arith.mulf %127, %131 : vector<2x64xf32>
    %133 = vector.extract_strided_slice %132 {offsets = [0, 0], sizes = [2, 32], strides = [1, 1]} : vector<2x64xf32> to vector<2x32xf32>
    %134 = vector.extract_strided_slice %132 {offsets = [0, 32], sizes = [2, 32], strides = [1, 1]} : vector<2x64xf32> to vector<2x32xf32>
    %135 = vector.extract_strided_slice %5 {offsets = [12, 0], sizes = [2, 256], strides = [1, 1]} : vector<16x256xf32> to vector<2x256xf32>
    %cst_21 = arith.constant dense<0.000000e+00> : vector<2x256xf32>
    %136 = tpu.matmul %132, %6, %cst_21 {dimension_numbers = #tpu.dot_dimension_numbers<[1], [0], [0], [1], [0, 0, 1, 1], [], []>} : vector<2x64xf32>, vector<64x256xf32>, vector<2x256xf32> -> vector<2x256xf32>
    %137 = arith.addf %135, %136 : vector<2x256xf32>
    %138 = vector.extract_strided_slice %137 {offsets = [0, 0], sizes = [2, 192], strides = [1, 1]} : vector<2x256xf32> to vector<2x192xf32>
    %139 = arith.negf %138 : vector<2x192xf32>
    %140 = math.exp %139 : vector<2x192xf32>
    %cst_22 = arith.constant 1.000000e+00 : f32
    %141 = vector.broadcast %cst_22 : f32 to vector<2x192xf32>
    %142 = arith.addf %141, %140 : vector<2x192xf32>
    %143 = arith.divf %141, %142 : vector<2x192xf32>
    %144 = vector.extract_strided_slice %137 {offsets = [0, 192], sizes = [2, 64], strides = [1, 1]} : vector<2x256xf32> to vector<2x64xf32>
    %145 = math.tanh %144 : vector<2x64xf32>
    %146 = vector.extract_strided_slice %143 {offsets = [0, 0], sizes = [2, 64], strides = [1, 1]} : vector<2x192xf32> to vector<2x64xf32>
    %147 = vector.extract_strided_slice %143 {offsets = [0, 64], sizes = [2, 64], strides = [1, 1]} : vector<2x192xf32> to vector<2x64xf32>
    %148 = vector.extract_strided_slice %143 {offsets = [0, 128], sizes = [2, 64], strides = [1, 1]} : vector<2x192xf32> to vector<2x64xf32>
    %149 = arith.mulf %147, %130 : vector<2x64xf32>
    %150 = arith.mulf %146, %145 : vector<2x64xf32>
    %151 = arith.addf %149, %150 : vector<2x64xf32>
    %152 = math.tanh %151 : vector<2x64xf32>
    %153 = arith.mulf %148, %152 : vector<2x64xf32>
    %154 = vector.extract_strided_slice %153 {offsets = [0, 0], sizes = [2, 32], strides = [1, 1]} : vector<2x64xf32> to vector<2x32xf32>
    %155 = vector.extract_strided_slice %153 {offsets = [0, 32], sizes = [2, 32], strides = [1, 1]} : vector<2x64xf32> to vector<2x32xf32>
    %156 = vector.extract_strided_slice %5 {offsets = [14, 0], sizes = [2, 256], strides = [1, 1]} : vector<16x256xf32> to vector<2x256xf32>
    %cst_23 = arith.constant dense<0.000000e+00> : vector<2x256xf32>
    %157 = tpu.matmul %153, %6, %cst_23 {dimension_numbers = #tpu.dot_dimension_numbers<[1], [0], [0], [1], [0, 0, 1, 1], [], []>} : vector<2x64xf32>, vector<64x256xf32>, vector<2x256xf32> -> vector<2x256xf32>
    %158 = arith.addf %156, %157 : vector<2x256xf32>
    %159 = vector.extract_strided_slice %158 {offsets = [0, 0], sizes = [2, 192], strides = [1, 1]} : vector<2x256xf32> to vector<2x192xf32>
    %160 = arith.negf %159 : vector<2x192xf32>
    %161 = math.exp %160 : vector<2x192xf32>
    %cst_24 = arith.constant 1.000000e+00 : f32
    %162 = vector.broadcast %cst_24 : f32 to vector<2x192xf32>
    %163 = arith.addf %162, %161 : vector<2x192xf32>
    %164 = arith.divf %162, %163 : vector<2x192xf32>
    %165 = vector.extract_strided_slice %158 {offsets = [0, 192], sizes = [2, 64], strides = [1, 1]} : vector<2x256xf32> to vector<2x64xf32>
    %166 = math.tanh %165 : vector<2x64xf32>
    %167 = vector.extract_strided_slice %164 {offsets = [0, 0], sizes = [2, 64], strides = [1, 1]} : vector<2x192xf32> to vector<2x64xf32>
    %168 = vector.extract_strided_slice %164 {offsets = [0, 64], sizes = [2, 64], strides = [1, 1]} : vector<2x192xf32> to vector<2x64xf32>
    %169 = vector.extract_strided_slice %164 {offsets = [0, 128], sizes = [2, 64], strides = [1, 1]} : vector<2x192xf32> to vector<2x64xf32>
    %170 = arith.mulf %168, %151 : vector<2x64xf32>
    %171 = arith.mulf %167, %166 : vector<2x64xf32>
    %172 = arith.addf %170, %171 : vector<2x64xf32>
    %173 = math.tanh %172 : vector<2x64xf32>
    %174 = arith.mulf %169, %173 : vector<2x64xf32>
    %175 = vector.extract_strided_slice %174 {offsets = [0, 0], sizes = [2, 32], strides = [1, 1]} : vector<2x64xf32> to vector<2x32xf32>
    %176 = vector.extract_strided_slice %174 {offsets = [0, 32], sizes = [2, 32], strides = [1, 1]} : vector<2x64xf32> to vector<2x32xf32>
    %177 = vector.extract_strided_slice %174 {offsets = [0, 0], sizes = [2, 32], strides = [1, 1]} : vector<2x64xf32> to vector<2x32xf32>
    %c0_25 = arith.constant 0 : index
    %c0_26 = arith.constant 0 : index
    %c0_27 = arith.constant 0 : index
    %178 = vector.load %arg8[%c0_25, %c0_26, %c0_27] : memref<2x2x32xf32, #tpu.memory_space<vmem>>, vector<1x2x32xf32>
    %179 = vector.shape_cast %178 : vector<1x2x32xf32> to vector<2x32xf32>
    %180 = vector.shape_cast %177 : vector<2x32xf32> to vector<1x2x32xf32>
    tpu.vector_store %arg8[%c0_25, %c0_26, %c0_27], %180 {strides = array<i32>} : memref<2x2x32xf32, #tpu.memory_space<vmem>>, vector<1x2x32xf32>,
    %181 = vector.extract_strided_slice %174 {offsets = [0, 32], sizes = [2, 32], strides = [1, 1]} : vector<2x64xf32> to vector<2x32xf32>
    %c1 = arith.constant 1 : index
    %c0_28 = arith.constant 0 : index
    %c0_29 = arith.constant 0 : index
    %182 = vector.load %arg8[%c1, %c0_28, %c0_29] : memref<2x2x32xf32, #tpu.memory_space<vmem>>, vector<1x2x32xf32>
    %183 = vector.shape_cast %182 : vector<1x2x32xf32> to vector<2x32xf32>
    %184 = vector.shape_cast %181 : vector<2x32xf32> to vector<1x2x32xf32>
    tpu.vector_store %arg8[%c1, %c0_28, %c0_29], %184 {strides = array<i32>} : memref<2x2x32xf32, #tpu.memory_space<vmem>>, vector<1x2x32xf32>,
    %185 = vector.extract_strided_slice %172 {offsets = [0, 0], sizes = [2, 32], strides = [1, 1]} : vector<2x64xf32> to vector<2x32xf32>
    %c0_30 = arith.constant 0 : index
    %c0_31 = arith.constant 0 : index
    %c0_32 = arith.constant 0 : index
    %186 = vector.load %arg9[%c0_30, %c0_31, %c0_32] : memref<2x2x32xf32, #tpu.memory_space<vmem>>, vector<1x2x32xf32>
    %187 = vector.shape_cast %186 : vector<1x2x32xf32> to vector<2x32xf32>
    %188 = vector.shape_cast %185 : vector<2x32xf32> to vector<1x2x32xf32>
    tpu.vector_store %arg9[%c0_30, %c0_31, %c0_32], %188 {strides = array<i32>} : memref<2x2x32xf32, #tpu.memory_space<vmem>>, vector<1x2x32xf32>,
    %189 = vector.extract_strided_slice %172 {offsets = [0, 32], sizes = [2, 32], strides = [1, 1]} : vector<2x64xf32> to vector<2x32xf32>
    %c1_33 = arith.constant 1 : index
    %c0_34 = arith.constant 0 : index
    %c0_35 = arith.constant 0 : index
    %190 = vector.load %arg9[%c1_33, %c0_34, %c0_35] : memref<2x2x32xf32, #tpu.memory_space<vmem>>, vector<1x2x32xf32>
    %191 = vector.shape_cast %190 : vector<1x2x32xf32> to vector<2x32xf32>
    %192 = vector.shape_cast %189 : vector<2x32xf32> to vector<1x2x32xf32>
    tpu.vector_store %arg9[%c1_33, %c0_34, %c0_35], %192 {strides = array<i32>} : memref<2x2x32xf32, #tpu.memory_space<vmem>>, vector<1x2x32xf32>,
    %193 = tpu.concatenate %28, %176 in 1 : vector<2x32xf32>, vector<2x32xf32> -> vector<2x64xf32>
    %194 = tpu.concatenate %49, %155 in 1 : vector<2x32xf32>, vector<2x32xf32> -> vector<2x64xf32>
    %195 = tpu.concatenate %70, %134 in 1 : vector<2x32xf32>, vector<2x32xf32> -> vector<2x64xf32>
    %196 = tpu.concatenate %91, %113 in 1 : vector<2x32xf32>, vector<2x32xf32> -> vector<2x64xf32>
    %197 = tpu.concatenate %112, %92 in 1 : vector<2x32xf32>, vector<2x32xf32> -> vector<2x64xf32>
    %198 = tpu.concatenate %133, %71 in 1 : vector<2x32xf32>, vector<2x32xf32> -> vector<2x64xf32>
    %199 = tpu.concatenate %154, %50 in 1 : vector<2x32xf32>, vector<2x32xf32> -> vector<2x64xf32>
    %200 = tpu.concatenate %175, %29 in 1 : vector<2x32xf32>, vector<2x32xf32> -> vector<2x64xf32>
    %201 = tpu.concatenate %193, %194, %195, %196, %197, %198, %199, %200 in 0 : vector<2x64xf32>, vector<2x64xf32>, vector<2x64xf32>, vector<2x64xf32>, vector<2x64xf32>, vector<2x64xf32>, vector<2x64xf32>, vector<2x64xf32> -> vector<16x64xf32>
    %c0_36 = arith.constant 0 : index
    %c0_37 = arith.constant 0 : index
    %202 = vector.load %arg4[%c0_36, %c0_37] : memref<64x64xf32, #tpu.memory_space<vmem>>, vector<64x64xf32>
    %cst_38 = arith.constant dense<0.000000e+00> : vector<16x64xf32>
    %203 = tpu.matmul %201, %202, %cst_38 {dimension_numbers = #tpu.dot_dimension_numbers<[1], [0], [0], [1], [0, 0, 1, 1], [], []>} : vector<16x64xf32>, vector<64x64xf32>, vector<16x64xf32> -> vector<16x64xf32>
    %c0_39 = arith.constant 0 : index
    %c0_40 = arith.constant 0 : index
    %204 = vector.load %arg5[%c0_39, %c0_40] : memref<1x64xf32, #tpu.memory_space<vmem>>, vector<1x64xf32>
    %205 = vector.broadcast %204 : vector<1x64xf32> to vector<16x64xf32>
    %206 = arith.addf %203, %205 : vector<16x64xf32>
    %207 = math.tanh %206 : vector<16x64xf32>
    %c0_41 = arith.constant 0 : index
    %c0_42 = arith.constant 0 : index
    %208 = vector.load %arg6[%c0_41, %c0_42] : memref<1x64xf32, #tpu.memory_space<vmem>>, vector<1x64xf32>
    %209 = vector.broadcast %208 : vector<1x64xf32> to vector<16x64xf32>
    %210 = arith.mulf %207, %209 : vector<16x64xf32>
    %cst_43 = arith.constant dense<0.000000e+00> : vector<16xf32>
    %211 = vector.multi_reduction <add>, %210, %cst_43 [1] : vector<16x64xf32> to vector<16xf32>
    %212 = vector.shape_cast %211 : vector<16xf32> to vector<16x1xf32>
    %213 = vector.extract_strided_slice %212 {offsets = [0, 0], sizes = [2, 1], strides = [1, 1]} : vector<16x1xf32> to vector<2x1xf32>
    %214 = vector.extract_strided_slice %212 {offsets = [2, 0], sizes = [2, 1], strides = [1, 1]} : vector<16x1xf32> to vector<2x1xf32>
    %215 = vector.extract_strided_slice %212 {offsets = [4, 0], sizes = [2, 1], strides = [1, 1]} : vector<16x1xf32> to vector<2x1xf32>
    %216 = vector.extract_strided_slice %212 {offsets = [6, 0], sizes = [2, 1], strides = [1, 1]} : vector<16x1xf32> to vector<2x1xf32>
    %217 = vector.extract_strided_slice %212 {offsets = [8, 0], sizes = [2, 1], strides = [1, 1]} : vector<16x1xf32> to vector<2x1xf32>
    %218 = vector.extract_strided_slice %212 {offsets = [10, 0], sizes = [2, 1], strides = [1, 1]} : vector<16x1xf32> to vector<2x1xf32>
    %219 = vector.extract_strided_slice %212 {offsets = [12, 0], sizes = [2, 1], strides = [1, 1]} : vector<16x1xf32> to vector<2x1xf32>
    %220 = vector.extract_strided_slice %212 {offsets = [14, 0], sizes = [2, 1], strides = [1, 1]} : vector<16x1xf32> to vector<2x1xf32>
    %221 = tpu.concatenate %213, %214, %215, %216, %217, %218, %219, %220 in 1 : vector<2x1xf32>, vector<2x1xf32>, vector<2x1xf32>, vector<2x1xf32>, vector<2x1xf32>, vector<2x1xf32>, vector<2x1xf32>, vector<2x1xf32> -> vector<2x8xf32>
    %cst_44 = arith.constant dense<0xFF800000> : vector<2xf32>
    %222 = vector.multi_reduction <maximumf>, %221, %cst_44 [1] : vector<2x8xf32> to vector<2xf32>
    %223 = vector.shape_cast %222 : vector<2xf32> to vector<2x1xf32>
    %224 = vector.broadcast %223 : vector<2x1xf32> to vector<2x8xf32>
    %225 = arith.subf %221, %224 : vector<2x8xf32>
    %226 = math.exp %225 : vector<2x8xf32>
    %cst_45 = arith.constant dense<0.000000e+00> : vector<2xf32>
    %227 = vector.multi_reduction <add>, %226, %cst_45 [1] : vector<2x8xf32> to vector<2xf32>
    %228 = vector.shape_cast %227 : vector<2xf32> to vector<2x1xf32>
    %229 = tpu.reciprocal %228 {approx = true} : vector<2x1xf32> -> vector<2x1xf32>
    %230 = vector.broadcast %229 : vector<2x1xf32> to vector<2x8xf32>
    %231 = arith.mulf %226, %230 : vector<2x8xf32>
    %c0_46 = arith.constant 0 : index
    %c0_47 = arith.constant 0 : index
    %232 = vector.load %arg10[%c0_46, %c0_47] : memref<2x8xf32, #tpu.memory_space<vmem>>, vector<2x8xf32>
    tpu.vector_store %arg10[%c0_46, %c0_47], %231 {strides = array<i32>} : memref<2x8xf32, #tpu.memory_space<vmem>>, vector<2x8xf32>,
    %cst_48 = arith.constant 0.000000e+00 : f32
    %233 = vector.broadcast %cst_48 : f32 to vector<2x64xf32>
    %234 = vector.extract_strided_slice %231 {offsets = [0, 0], sizes = [2, 1], strides = [1, 1]} : vector<2x8xf32> to vector<2x1xf32>
    %235 = vector.broadcast %234 : vector<2x1xf32> to vector<2x64xf32>
    %236 = arith.mulf %193, %235 : vector<2x64xf32>
    %237 = arith.addf %233, %236 : vector<2x64xf32>
    %238 = vector.extract_strided_slice %231 {offsets = [0, 1], sizes = [2, 1], strides = [1, 1]} : vector<2x8xf32> to vector<2x1xf32>
    %239 = vector.broadcast %238 : vector<2x1xf32> to vector<2x64xf32>
    %240 = arith.mulf %194, %239 : vector<2x64xf32>
    %241 = arith.addf %237, %240 : vector<2x64xf32>
    %242 = vector.extract_strided_slice %231 {offsets = [0, 2], sizes = [2, 1], strides = [1, 1]} : vector<2x8xf32> to vector<2x1xf32>
    %243 = vector.broadcast %242 : vector<2x1xf32> to vector<2x64xf32>
    %244 = arith.mulf %195, %243 : vector<2x64xf32>
    %245 = arith.addf %241, %244 : vector<2x64xf32>
    %246 = vector.extract_strided_slice %231 {offsets = [0, 3], sizes = [2, 1], strides = [1, 1]} : vector<2x8xf32> to vector<2x1xf32>
    %247 = vector.broadcast %246 : vector<2x1xf32> to vector<2x64xf32>
    %248 = arith.mulf %196, %247 : vector<2x64xf32>
    %249 = arith.addf %245, %248 : vector<2x64xf32>
    %250 = vector.extract_strided_slice %231 {offsets = [0, 4], sizes = [2, 1], strides = [1, 1]} : vector<2x8xf32> to vector<2x1xf32>
    %251 = vector.broadcast %250 : vector<2x1xf32> to vector<2x64xf32>
    %252 = arith.mulf %197, %251 : vector<2x64xf32>
    %253 = arith.addf %249, %252 : vector<2x64xf32>
    %254 = vector.extract_strided_slice %231 {offsets = [0, 5], sizes = [2, 1], strides = [1, 1]} : vector<2x8xf32> to vector<2x1xf32>
    %255 = vector.broadcast %254 : vector<2x1xf32> to vector<2x64xf32>
    %256 = arith.mulf %198, %255 : vector<2x64xf32>
    %257 = arith.addf %253, %256 : vector<2x64xf32>
    %258 = vector.extract_strided_slice %231 {offsets = [0, 6], sizes = [2, 1], strides = [1, 1]} : vector<2x8xf32> to vector<2x1xf32>
    %259 = vector.broadcast %258 : vector<2x1xf32> to vector<2x64xf32>
    %260 = arith.mulf %199, %259 : vector<2x64xf32>
    %261 = arith.addf %257, %260 : vector<2x64xf32>
    %262 = vector.extract_strided_slice %231 {offsets = [0, 7], sizes = [2, 1], strides = [1, 1]} : vector<2x8xf32> to vector<2x1xf32>
    %263 = vector.broadcast %262 : vector<2x1xf32> to vector<2x64xf32>
    %264 = arith.mulf %200, %263 : vector<2x64xf32>
    %265 = arith.addf %261, %264 : vector<2x64xf32>
    %c0_49 = arith.constant 0 : index
    %c0_50 = arith.constant 0 : index
    %266 = vector.load %arg7[%c0_49, %c0_50] : memref<2x64xf32, #tpu.memory_space<vmem>>, vector<2x64xf32>
    tpu.vector_store %arg7[%c0_49, %c0_50], %265 {strides = array<i32>} : memref<2x64xf32, #tpu.memory_space<vmem>>, vector<2x64xf32>,
    return
  }
}

</mosaic_0001>

<bundles_post_ra>
// kernel: tpu_custom_call.1
= control target key start
LH: loop header
LB: loop body
LE: loop exit
PB: predicated region body
PF: predicated region fallthrough
CT: control target
= control target key end

     0   :  { %16 = vsyncpa [#allocation3], 0  ;;  %s2211_s0 = inlined_call_operand.hbm [shape: f32[16,64], index: 0, kind: input, shape index: {}]   ;;  %s2212_s1 = inlined_call_operand.hbm [shape: f32[64,256], index: 1, kind: input, shape index: {}]   ;;  %s2213_s2 = inlined_call_operand.hbm [shape: f32[64,256], index: 2, kind: input, shape index: {}]   ;;  %s2214_s3 = inlined_call_operand.vmem [shape: f32[1,256], index: 3, kind: input, shape index: {}]   ;;  %s2215_s4 = inlined_call_operand.hbm [shape: f32[64,64], index: 4, kind: input, shape index: {}]   ;;  %s2216_s5 = inlined_call_operand.vmem [shape: f32[1,64], index: 5, kind: input, shape index: {}]   ;;  %s2217_s6 = inlined_call_operand.vmem [shape: f32[1,64], index: 6, kind: input, shape index: {}]   ;;  %s2218_s7 = inlined_call_operand.hbm [shape: f32[2,64], index: 7, kind: output, shape index: {0}]   ;;  %s2219_s8 = inlined_call_operand.hbm [shape: f32[2,2,32], index: 8, kind: output, shape index: {1}]   ;;  %s2220_s9 = inlined_call_operand.hbm [shape: f32[2,2,32], index: 9, kind: output, shape index: {2}]   ;;  %s2221_s10 = inlined_call_operand.hbm [shape: f32[2,8], index: 10, kind: output, shape index: {3}]  }
   0x1   :  { %17 = vsyncpa [#allocation6], 0 }
   0x2   :  { %18 = vsyncpa [#allocation9], 0 }
   0x3   :  { %19 = vsyncpa [#allocation4], 0 }
   0x4   :  { %20 = vsyncpa [#allocation12], 0  ;;  %s39_s15 = sshll.u32 %s2212_s1, 4  ;;  %s40_s15 = int_to_ptr.hbm [resolvable:$true] %s39_s15 }
   0x5   :  { %21 = vsyncpa [#allocation15], 0  ;;  %s1731_s16 = smov [#allocation5]   ;;  %s26_s20 = sshll.u32 %s2211_s0, 4  ;;  %s27_s20 = int_to_ptr.hbm [resolvable:$true] %s26_s20 }
   0x6   :  { %s41_s17 = sshll.u32 %s1731_s16, 4  ;;  %s1732_s21 = smov 256   ;;  %s42_s17 = int_to_ptr.vmem [resolvable:$true] %s41_s17 }
   0x7   :  { %s1733_s22 = smov 16   ;;  %s1734_s23 = smov [#allocation2]  }
   0x8   :  { %47 = dma.hbm_to_vmem [thread:$0]  %s40_s15, 2048, %s42_s17, [#allocation6], %s1732_s21, %s1732_s21, %s1733_s22  }
   0x9   :  { %s28_s24 = sshll.u32 %s1734_s23, 4  ;;  %s1735_s25 = smov 128   ;;  %s29_s24 = int_to_ptr.vmem [resolvable:$true] %s28_s24 }
   0xa   :  { %s1736_s26 = smov 8   ;;  %s52_s28 = sshll.u32 %s2213_s2, 4  ;;  %s53_s28 = int_to_ptr.hbm [resolvable:$true] %s52_s28 }
   0xb   :  { %34 = dma.hbm_to_vmem [thread:$0]  %s27_s20, 256, %s29_s24, [#allocation3], %s1735_s25, %s1735_s25, %s1736_s26  }
   0xc   :  { %s1737_s29 = smov [#allocation7]   ;;  %s67_s12 = sshll.u32 %s2215_s4, 4  ;;  %s68_s12 = int_to_ptr.hbm [resolvable:$true] %s67_s12 }
   0xd   :  { %s54_s30 = sshll.u32 %s1737_s29, 4  ;;  %s1738_s13 = smov [#allocation8]   ;;  %s55_s30 = int_to_ptr.vmem [resolvable:$true] %s54_s30 }
   0xe   :  { %60 = dma.hbm_to_vmem [thread:$0]  %s53_s28, 2048, %s55_s30, [#allocation6], %s1732_s21, %s1732_s21, %s1733_s22  }
   0xf   :  { %s69_s14 = sshll.u32 %s1738_s13, 4  ;;  %s70_s14 = int_to_ptr.vmem [resolvable:$true] %s69_s14 }
  0x10   :  { %75 = dma.hbm_to_vmem [thread:$0]  %s68_s12, 1024, %s70_s14, [#allocation9], %s1735_s25, %s1735_s25, %s1736_s26  }
  0x11   :  { %1719 = dma.done.wait [#allocation3], 256  }
  0x12   :  { %1720 = vsyncadd [#allocation3], 4294967040 }
  0x13   :  { %1721 = dma.done.wait [#allocation6], 4096  }
  0x14   :  { %1722 = vsyncadd [#allocation6], 4294963200 }
  0x15   :  { %1723 = dma.done.wait [#allocation9], 1024  }
  0x16   :  { %1724 = vsyncadd [#allocation9], 4294966272  ;;  %v1823_v0 = vld [vmem:[#allocation7 + $0x70] sm:$0xff]  ;;  %v1825_v1 = vld [vmem:[#allocation7 + $0x60] sm:$0xff]  ;;  %vm120_vm0 = vcmask 523264   ;;  %v1739_v23 = vmov 0.0  }
  0x17   :  { %v112_v2 = vld [vmem:[#allocation5 + $0x70] sm:$0xff]  ;;  %200 = vmatpush.msra.mxu3 %v1823_v0  ;;  %v110_v3 = vld [vmem:[#allocation5 + $0x60] sm:$0xff]  ;;  %412 = vmatpush.msra.mxu2 %v1823_v0  ;;  %v113_v10 = vld [vmem:[#allocation5 + $0x78] sm:$0xff]  ;;  %s1740_s15 = smov 64   ;;  %s1298_s22 = sshll.u32 %s2219_s8, 4  ;;  %s1299_s22 = int_to_ptr.hbm [resolvable:$true] %s1298_s22 }
  0x18   :  { %135 = vmatpush.msra.mxu0 %v112_v2  ;;  %v1828_v4 = vld [vmem:[#allocation7 + $0x50] sm:$0xff]  ;;  %v1832_v6 = vld [vmem:[#allocation7 + $0x40] sm:$0xff]  ;;  %v111_v11 = vld [vmem:[#allocation5 + $0x68] sm:$0xff]  ;;  %158 = vmatpush.msra.mxu1 %v113_v10  ;;  %s1749_s23 = smov 32   ;;  %s1750_s24 = smov 2  }
  0x19   :  { %v108_v5 = vld [vmem:[#allocation5 + $0x50] sm:$0xff]  ;;  %201 = vmatpush.msra.mxu3 %v1825_v1  ;;  %v106_v7 = vld [vmem:[#allocation5 + $0x40] sm:$0xff]  ;;  %413 = vmatpush.msra.mxu2 %v1825_v1  ;;  %v109_v14 = vld [vmem:[#allocation5 + $0x58] sm:$0xff]  ;;  %s1753_s25 = smov [#allocation14]   ;;  %s1325_s8 = sshll.u32 %s2221_s10, 4  ;;  %s1326_s8 = int_to_ptr.hbm [resolvable:$true] %s1325_s8 }
  0x1a   :  { %136 = vmatpush.msra.mxu0 %v110_v3  ;;  %v1836_v8 = vld [vmem:[#allocation7 + $0x30] sm:$0xff]  ;;  %v1840_v12 = vld [vmem:[#allocation7 + $0x20] sm:$0xff]  ;;  %159 = vmatpush.msra.mxu1 %v111_v11  ;;  %v107_v17 = vld [vmem:[#allocation5 + $0x48] sm:$0xff]  ;;  %s1323_s26 = sshll.u32 %s1753_s25, 4  ;;  %s1754_s10 = smov [#allocation13]   ;;  %s1324_s26 = int_to_ptr.vmem [resolvable:$true] %s1323_s26 }
  0x1b   :  { %202 = vmatpush.msra.mxu3 %v1828_v4  ;;  %v104_v9 = vld [vmem:[#allocation5 + $0x30] sm:$0xff]  ;;  %414 = vmatpush.msra.mxu2 %v1828_v4  ;;  %v102_v13 = vld [vmem:[#allocation5 + $0x20] sm:$0xff]  ;;  %v1852_v21 = vld [vmem:[#allocation7 + $0x78] sm:$0xff]  ;;  %s1309_s28 = sshll.u32 %s1754_s10, 4  ;;  %s1311_s11 = sshll.u32 %s2220_s9, 4  ;;  %s1310_s28 = int_to_ptr.vmem [resolvable:$true] %s1309_s28  ;;  %s1312_s11 = int_to_ptr.hbm [resolvable:$true] %s1311_s11 }
  0x1c   :  { %137 = vmatpush.msra.mxu0 %v108_v5  ;;  %v1844_v15 = vld [vmem:[#allocation7 + $0x10] sm:$0xff]  ;;  %v1848_v18 = vld [vmem:[#allocation7] sm:$0xff]  ;;  %160 = vmatpush.msra.mxu1 %v109_v14  ;;  %v105_v22 = vld [vmem:[#allocation5 + $0x38] sm:$0xff]  ;;  %s1755_s0 = smov [#allocation10]   ;;  %s1288_s2 = sshll.u32 %s2218_s7, 4  ;;  %s1289_s2 = int_to_ptr.hbm [resolvable:$true] %s1288_s2 }
  0x1d   :  { %203 = vmatpush.msra.mxu3 %v1832_v6  ;;  %415 = vmatpush.msra.mxu2 %v1832_v6  ;;  %v100_v16 = vld [vmem:[#allocation5 + $0x10] sm:$0xff]  ;;  %v98_v19 = vld [vmem:[#allocation5] sm:$0xff]  ;;  %v1856_v24 = vld [vmem:[#allocation7 + $0x68] sm:$0xff]  ;;  %s1286_s12 = sshll.u32 %s1755_s0, 4  ;;  %s1287_s12 = int_to_ptr.vmem [resolvable:$true] %s1286_s12 }
  0x1e   :  { %138 = vmatpush.msra.mxu0 %v106_v7  ;;  %v96_v20 = vld [vmem:[#allocation2] sm:$0xff]  ;;  %161 = vmatpush.msra.mxu1 %v107_v17  ;;  %v103_v25 = vld [vmem:[#allocation5 + $0x28] sm:$0xff]  ;;  %v1860_v26 = vld [vmem:[#allocation7 + $0x58] sm:$0xff] }
  0x1f   :  { %204 = vmatpush.msra.mxu3 %v1836_v8  ;;  %416 = vmatpush.msra.mxu2 %v1836_v8  ;;  %v101_v27 = vld [vmem:[#allocation5 + $0x18] sm:$0xff]  ;;  %v1865_v28 = vld [vmem:[#allocation7 + $0x48] sm:$0xff]  ;;  %v1940_v34 = vld [vmem:[%s2214_s3] sm:$0x3] }
  0x20   :  { %139 = vmatpush.msra.mxu0 %v104_v9  ;;  %162 = vmatpush.msra.mxu1 %v105_v22  ;;  %v99_v29 = vld [vmem:[#allocation5 + $0x8] sm:$0xff]  ;;  %v1870_v30 = vld [vmem:[#allocation7 + $0x38] sm:$0xff]  ;;  %v117_v36 = vperm.slane %v1940_v34, 1  ;;  %v116_v42 = vperm.slane %v1940_v34, 0 }
  0x21   :  { %205 = vmatpush.msra.mxu3 %v1840_v12  ;;  %417 = vmatpush.msra.mxu2 %v1840_v12  ;;  %v1875_v31 = vld [vmem:[#allocation7 + $0x28] sm:$0xff]  ;;  %v1881_v32 = vld [vmem:[#allocation7 + $0x18] sm:$0xff] }
  0x22   :  { %140 = vmatpush.msra.mxu0 %v102_v13  ;;  %163 = vmatpush.msra.mxu1 %v103_v25  ;;  %v1887_v33 = vld [vmem:[#allocation7 + $0x8] sm:$0xff]  ;;  %v97_v61 = vld [vmem:[#allocation2 + $0x8] sm:$0xff] }
  0x23   :  { %206 = vmatpush.msra.mxu3 %v1844_v15  ;;  %418 = vmatpush.msra.mxu2 %v1844_v15 }
  0x24   :  { %141 = vmatpush.msra.mxu0 %v100_v16  ;;  %164 = vmatpush.msra.mxu1 %v101_v27 }
  0x25   :  { %207 = vmatpush.msra.mxu3 %v1848_v18  ;;  %419 = vmatpush.msra.mxu2 %v1848_v18 }
  0x26   :  { %142 = vmatpush.msra.mxu0 %v98_v19  ;;  %208 = vmatmul.f32.vlgmr.msra.gmra.mxu3 %v1739_v23 }
  0x27   :  { %1351 = vmatmul.msk.f32.vlgmr.msra.gmra.mxu0 %vm120_vm0, %v96_v20  ;;  %220 = vmatpush.msrb.mxu3 %v1852_v21 }
  0x28   :  { %301 = vmatpush.msrb.mxu0 %v1823_v0  ;;  %634 = vmatpush.msrb.mxu2 %v1823_v0 }
  0x29   :  { %221 = vmatpush.msrb.mxu3 %v1856_v24  ;;  %165 = vmatpush.msra.mxu1 %v99_v29 }
  0x2a   :  { %302 = vmatpush.msrb.mxu0 %v1825_v1  ;;  %635 = vmatpush.msrb.mxu2 %v1825_v1 }
  0x2b   :  { %222 = vmatpush.msrb.mxu3 %v1860_v26  ;;  %1353 = vmatmul.msk.f32.vlgmr.msra.gmra.mxu1 %vm120_vm0, %v96_v20 }
  0x2c   :  { %303 = vmatpush.msrb.mxu0 %v1828_v4  ;;  %321 = vmatpush.msrb.mxu1 %v1852_v21 }
  0x2d   :  { %223 = vmatpush.msrb.mxu3 %v1865_v28  ;;  %636 = vmatpush.msrb.mxu2 %v1828_v4 }
  0x2e   :  { %304 = vmatpush.msrb.mxu0 %v1832_v6  ;;  %322 = vmatpush.msrb.mxu1 %v1856_v24 }
  0x2f   :  { %224 = vmatpush.msrb.mxu3 %v1870_v30  ;;  %637 = vmatpush.msrb.mxu2 %v1832_v6 }
  0x30   :  { %305 = vmatpush.msrb.mxu0 %v1836_v8  ;;  %323 = vmatpush.msrb.mxu1 %v1860_v26 }
  0x31   :  { %225 = vmatpush.msrb.mxu3 %v1875_v31  ;;  %638 = vmatpush.msrb.mxu2 %v1836_v8 }
  0x32   :  { %306 = vmatpush.msrb.mxu0 %v1840_v12  ;;  %324 = vmatpush.msrb.mxu1 %v1865_v28 }
  0x33   :  { %226 = vmatpush.msrb.mxu3 %v1881_v32  ;;  %639 = vmatpush.msrb.mxu2 %v1840_v12 }
  0x34   :  { %307 = vmatpush.msrb.mxu0 %v1844_v15  ;;  %325 = vmatpush.msrb.mxu1 %v1870_v30 }
  0x35   :  { %227 = vmatpush.msrb.mxu3 %v1887_v33  ;;  %640 = vmatpush.msrb.mxu2 %v1844_v15 }
  0x36   :  { %228 = vmatmul.f32.vlgmr.msrb.gmra.mxu3 %v1739_v23  ;;  %308 = vmatpush.msrb.mxu0 %v1848_v18 }
  0x37   :  { %432 = vmatpush.msra.mxu3 %v1852_v21  ;;  %326 = vmatpush.msrb.mxu1 %v1875_v31 }
  0x38   :  { %523 = vmatpush.msra.mxu0 %v1823_v0  ;;  %641 = vmatpush.msrb.mxu2 %v1848_v18 }
  0x39   :  { %433 = vmatpush.msra.mxu3 %v1856_v24  ;;  %327 = vmatpush.msrb.mxu1 %v1881_v32 }
  0x3a   :  { %524 = vmatpush.msra.mxu0 %v1825_v1  ;;  %1354 = vmatmul.msk.f32.gmra.mxu1 %vm120_vm0, %v97_v61 }
  0x3b   :  { %434 = vmatpush.msra.mxu3 %v1860_v26  ;;  %328 = vmatpush.msrb.mxu1 %v1887_v33 }
  0x3c   :  { %525 = vmatpush.msra.mxu0 %v1828_v4 }
  0x3d   :  { %435 = vmatpush.msra.mxu3 %v1865_v28  ;;  %543 = vmatpush.msra.mxu1 %v1852_v21 }
  0x3e   :  { %526 = vmatpush.msra.mxu0 %v1832_v6 }
  0x3f   :  { %436 = vmatpush.msra.mxu3 %v1870_v30  ;;  %544 = vmatpush.msra.mxu1 %v1856_v24 }
  0x40   :  { %527 = vmatpush.msra.mxu0 %v1836_v8 }
  0x41   :  { %437 = vmatpush.msra.mxu3 %v1875_v31  ;;  %545 = vmatpush.msra.mxu1 %v1860_v26 }
  0x42   :  { %528 = vmatpush.msra.mxu0 %v1840_v12 }
  0x43   :  { %438 = vmatpush.msra.mxu3 %v1881_v32  ;;  %546 = vmatpush.msra.mxu1 %v1865_v28 }
  0x44   :  { %529 = vmatpush.msra.mxu0 %v1844_v15 }
  0x45   :  { %439 = vmatpush.msra.mxu3 %v1887_v33  ;;  %547 = vmatpush.msra.mxu1 %v1870_v30 }
  0x46   :  { %530 = vmatpush.msra.mxu0 %v1848_v18 }
  0x47   :  { %654 = vmatpush.msrb.mxu3 %v1852_v21  ;;  %548 = vmatpush.msra.mxu1 %v1875_v31 }
  0x48   :  { %1352 = vmatmul.msk.f32.gmra.mxu0 %vm120_vm0, %v97_v61 }
  0x49   :  { %655 = vmatpush.msrb.mxu3 %v1856_v24  ;;  %549 = vmatpush.msra.mxu1 %v1881_v32 }
  0x4b   :  { %656 = vmatpush.msrb.mxu3 %v1860_v26  ;;  %550 = vmatpush.msra.mxu1 %v1887_v33 }
  0x4d   :  { %657 = vmatpush.msrb.mxu3 %v1865_v28 }
  0x4f   :  { %658 = vmatpush.msrb.mxu3 %v1870_v30 }
  0x51   :  { %659 = vmatpush.msrb.mxu3 %v1875_v31 }
  0x53   :  { %660 = vmatpush.msrb.mxu3 %v1881_v32 }
  0x55   :  { %661 = vmatpush.msrb.mxu3 %v1887_v33 }
  0xa4   :  { %v144_v43 = vpop.f32.mrf.mxu0 }
  0xa5   :  { %v1952_v44 = vadd.f32 %v144_v43, %v116_v42 }
  0xa8   :  { %v167_v37 = vpop.f32.mrf.mxu1 }
  0xa9   :  { %v209_v35 = vpop.f32.mrf.mxu3  ;;  %v1945_v38 = vadd.f32 %v167_v37, %v117_v36 }
  0xaa   :  { %v232_v45 = vadd.f32 %v209_v35, %v1952_v44 }
  0xac   :  { %v1355_v46 = vmul.f32 -1.442695, %v232_v45 }
  0xb7   :  { %v1984_v29 = vpop.f32.mrf.mxu1 }
  0xb9   :  { %v229_v39 = vpop.f32.mrf.mxu3 }
  0xba   :  { %v233_v40 = vadd.f32 %v229_v39, %v1945_v38 }
  0xbc   :  { %1423 = vtanh.f32 %v233_v40  ;;  %v1356_v5 = vmul.f32 -1.442695, %v233_v40 }
  0xbd   :  { %1425 = vpow2.f32 %v1355_v46 }
  0xc2   :  { %v1424_v41 = vpop.eup %1423 }
  0xc3   :  { %275 = vrot.lane.b32.xlu0 %v1424_v41, %s1740_s15  ;;  %v1426_v47 = vpop.eup %1425 }
  0xc4   :  { %v240_v48 = vadd.f32 1.0, %v1426_v47 }
  0xc5   :  { %v1988_v41 = vpop.f32.mrf.mxu0 }
  0xc6   :  { %1427 = vrcp.f32 %v240_v48  ;;  %vm247_vm1 = vweird.f32 %v240_v48  ;;  %v253_v54 = vand.u32 2147483648, %v240_v48  ;;  %v251_v55 = vand.u32 2147483647, %v240_v48 }
  0xc8   :  { %v254_v57 = vor.u32 1.1754944e-38, %v253_v54  ;;  %vm252_vm4 = vcmp.eq.f32.partialorder %v251_v55, 8.507059e+37 }
  0xcc   :  { %v1428_v49 = vpop.eup %1427 }
  0xcd   :  { %v243_v50 = vmul.f32 %v1428_v49, %v240_v48  ;;  %vm248_vm2 = vweird.f32 %v1428_v49 }
  0xce   :  { %vm249_vm3 = vmor %vm247_vm1, %vm248_vm2 }
  0xcf   :  { %v244_v51 = vsub.f32 1.0, %v243_v50 }
  0xd1   :  { %v245_v52 = vmul.f32 %v1428_v49, %v244_v51 }
  0xd3   :  { %v246_v53 = vadd.f32 %v1428_v49, %v245_v52 }
  0xd5   :  { %v250_v56 = vsel %vm249_vm3, %v1428_v49, %v246_v53 }
  0xd6   :  { %v255_v59 = vsel %vm252_vm4, %v254_v57, %v250_v56 }
  0xd7   :  { %v273_v62 = vmul.f32 0.0, %v255_v59 }
 0x135   :  { %v276_v58 = vpop.permute.xlu0 %275 }
 0x136   :  { %v278_v60 = vmul.f32 %v276_v58, %v255_v59 }
 0x138   :  { %280 = vrot.lane.b32.xlu0 %v278_v60, %s1740_s15 }
 0x1aa   :  { %v281_v63 = vpop.permute.xlu0 %280 }
 0x1ab   :  { %v1958_v2 = vadd.f32 %v281_v63, %v273_v62 }
 0x1ad   :  { %1429 = vtanh.f32 %v1958_v2  ;;  %v381_v62 = vrot.slane %v1958_v2, 6 }
 0x1ae   :  { %1431 = vpow2.f32 %v1356_v5 }
 0x1b3   :  { %v1430_v3 = vpop.eup %1429 }
 0x1b4   :  { %286 = vrot.lane.b32.xlu1 %v1430_v3, %s1740_s15  ;;  %v1432_v7 = vpop.eup %1431 }
 0x1b5   :  { %v241_v9 = vadd.f32 1.0, %v1432_v7 }
 0x1b7   :  { %1433 = vrcp.f32 %v241_v9  ;;  %v268_v17 = vand.u32 2147483648, %v241_v9  ;;  %vm262_vm6 = vweird.f32 %v241_v9  ;;  %v266_v19 = vand.u32 2147483647, %v241_v9 }
 0x1b9   :  { %v269_v22 = vor.u32 1.1754944e-38, %v268_v17  ;;  %vm267_vm8 = vcmp.eq.f32.partialorder %v266_v19, 8.507059e+37 }
 0x1bd   :  { %v1434_v10 = vpop.eup %1433 }
 0x1be   :  { %v258_v11 = vmul.f32 %v1434_v10, %v241_v9  ;;  %vm263_vm5 = vweird.f32 %v1434_v10 }
 0x1bf   :  { %vm264_vm7 = vmor %vm262_vm6, %vm263_vm5 }
 0x1c0   :  { %v259_v13 = vsub.f32 1.0, %v258_v11 }
 0x1c2   :  { %v260_v14 = vmul.f32 %v1434_v10, %v259_v13 }
 0x1c4   :  { %v261_v16 = vadd.f32 %v1434_v10, %v260_v14 }
 0x1c6   :  { %v265_v20 = vsel %vm264_vm7, %v1434_v10, %v261_v16 }
 0x1c7   :  { %v270_v23 = vsel %vm267_vm8, %v269_v22, %v265_v20 }
 0x226   :  { %v287_v25 = vpop.permute.xlu1 %286 }
 0x227   :  { %v1962_v27 = vmul.f32 %v287_v25, %v270_v23 }
 0x229   :  { %1357 = vmatmul.msk.f32.vlgmr.msrb.gmra.mxu0 %vm120_vm0, %v1962_v27  ;;  %1358 = vmatmul.msk.f32.vlgmr.msrb.gmra.mxu1 %vm120_vm0, %v1962_v27 }
 0x22a   :  { %738 = vmatpush.msrb.mxu0 %v1823_v0  ;;  %758 = vmatpush.msrb.mxu1 %v1852_v21 }
 0x22c   :  { %739 = vmatpush.msrb.mxu0 %v1825_v1  ;;  %759 = vmatpush.msrb.mxu1 %v1856_v24 }
 0x22e   :  { %740 = vmatpush.msrb.mxu0 %v1828_v4  ;;  %760 = vmatpush.msrb.mxu1 %v1860_v26 }
 0x230   :  { %741 = vmatpush.msrb.mxu0 %v1832_v6  ;;  %761 = vmatpush.msrb.mxu1 %v1865_v28 }
 0x232   :  { %742 = vmatpush.msrb.mxu0 %v1836_v8  ;;  %762 = vmatpush.msrb.mxu1 %v1870_v30 }
 0x234   :  { %743 = vmatpush.msrb.mxu0 %v1840_v12  ;;  %763 = vmatpush.msrb.mxu1 %v1875_v31 }
 0x236   :  { %744 = vmatpush.msrb.mxu0 %v1844_v15  ;;  %764 = vmatpush.msrb.mxu1 %v1881_v32 }
 0x238   :  { %745 = vmatpush.msrb.mxu0 %v1848_v18  ;;  %765 = vmatpush.msrb.mxu1 %v1887_v33 }
 0x2a6   :  { %v330_v35 = vpop.f32.mrf.mxu1  ;;  %v310_v43 = vpop.f32.mrf.mxu0 }
 0x2a7   :  { %v336_v37 = vrot.slane %v330_v35, 6  ;;  %v335_v45 = vrot.slane %v310_v43, 6 }
 0x2a9   :  { %v340_v39 = vadd.f32 %v336_v37, %v1945_v38  ;;  %v339_v46 = vadd.f32 %v335_v45, %v1952_v44 }
 0x2ab   :  { %1435 = vtanh.f32 %v340_v39  ;;  %v1359_v47 = vmul.f32 -1.442695, %v339_v46  ;;  %v1360_v9 = vmul.f32 -1.442695, %v340_v39 }
 0x2ad   :  { %1437 = vpow2.f32 %v1359_v47 }
 0x2b1   :  { %v1436_v40 = vpop.eup %1435 }
 0x2b2   :  { %385 = vrot.lane.b32.xlu1 %v1436_v40, %s1740_s15 }
 0x2b3   :  { %v1438_v48 = vpop.eup %1437 }
 0x2b4   :  { %v347_v49 = vadd.f32 1.0, %v1438_v48 }
 0x2b6   :  { %1439 = vrcp.f32 %v347_v49  ;;  %v360_v55 = vand.u32 2147483648, %v347_v49  ;;  %vm354_vm10 = vweird.f32 %v347_v49  ;;  %v358_v56 = vand.u32 2147483647, %v347_v49 }
 0x2b8   :  { %v361_v58 = vor.u32 1.1754944e-38, %v360_v55  ;;  %vm359_vm12 = vcmp.eq.f32.partialorder %v358_v56, 8.507059e+37 }
 0x2bc   :  { %v1440_v50 = vpop.eup %1439 }
 0x2bd   :  { %v350_v51 = vmul.f32 %v1440_v50, %v347_v49  ;;  %vm355_vm9 = vweird.f32 %v1440_v50 }
 0x2be   :  { %vm356_vm11 = vmor %vm354_vm10, %vm355_vm9 }
 0x2bf   :  { %v351_v52 = vsub.f32 1.0, %v350_v51 }
 0x2c1   :  { %v352_v53 = vmul.f32 %v1440_v50, %v351_v52 }
 0x2c3   :  { %v353_v54 = vadd.f32 %v1440_v50, %v352_v53 }
 0x2c5   :  { %v357_v57 = vsel %vm356_vm11, %v1440_v50, %v353_v54 }
 0x2c6   :  { %v362_v60 = vsel %vm359_vm12, %v361_v58, %v357_v57 }
 0x2c7   :  { %v383_v63 = vmul.f32 %v381_v62, %v362_v60 }
 0x324   :  { %v386_v59 = vpop.permute.xlu1 %385 }
 0x325   :  { %v388_v61 = vmul.f32 %v386_v59, %v362_v60 }
 0x327   :  { %390 = vrot.lane.b32.xlu2 %v388_v61, %s1740_s15 }
 0x381   :  { %v391_v3 = vpop.permute.xlu2 %390 }
 0x382   :  { %v1993_v5 = vadd.f32 %v391_v3, %v383_v63 }
 0x384   :  { %1441 = vtanh.f32 %v1993_v5 }
 0x385   :  { %1443 = vpow2.f32 %v1360_v9 }
 0x38a   :  { %v1442_v7 = vpop.eup %1441 }
 0x38b   :  { %396 = vrot.lane.b32.xlu2 %v1442_v7, %s1740_s15  ;;  %v1444_v10 = vpop.eup %1443  ;;  %v492_v7 = vrot.slane %v1993_v5, 6 }
 0x38c   :  { %v348_v11 = vadd.f32 1.0, %v1444_v10 }
 0x38e   :  { %1445 = vrcp.f32 %v348_v11  ;;  %v375_v2 = vand.u32 2147483648, %v348_v11  ;;  %vm369_vm14 = vweird.f32 %v348_v11  ;;  %v373_v20 = vand.u32 2147483647, %v348_v11 }
 0x390   :  { %v376_v23 = vor.u32 1.1754944e-38, %v375_v2  ;;  %vm374_vm1 = vcmp.eq.f32.partialorder %v373_v20, 8.507059e+37 }
 0x394   :  { %v1446_v13 = vpop.eup %1445 }
 0x395   :  { %v365_v14 = vmul.f32 %v1446_v13, %v348_v11  ;;  %vm370_vm13 = vweird.f32 %v1446_v13 }
 0x396   :  { %vm371_vm15 = vmor %vm369_vm14, %vm370_vm13 }
 0x397   :  { %v366_v16 = vsub.f32 1.0, %v365_v14 }
 0x399   :  { %v367_v17 = vmul.f32 %v1446_v13, %v366_v16 }
 0x39b   :  { %v368_v19 = vadd.f32 %v1446_v13, %v367_v17 }
 0x39d   :  { %v372_v22 = vsel %vm371_vm15, %v1446_v13, %v368_v19 }
 0x39e   :  { %v377_v25 = vsel %vm374_vm1, %v376_v23, %v372_v22 }
 0x3e5   :  { %v397_v35 = vpop.permute.xlu2 %396 }
 0x3e6   :  { %v1997_v37 = vmul.f32 %v397_v35, %v377_v25 }
 0x3e8   :  { %v401_v39 = vrot.slane %v1997_v37, 2 }
 0x3ea   :  { %1361 = vmatmul.msk.f32.vlgmr.msra.gmra.mxu2 %vm120_vm0, %v401_v39  ;;  %1362 = vmatmul.msk.f32.vlgmr.msra.gmra.mxu3 %vm120_vm0, %v401_v39 }
 0x3eb   :  { %849 = vmatpush.msra.mxu2 %v1823_v0  ;;  %869 = vmatpush.msra.mxu3 %v1852_v21 }
 0x3ed   :  { %850 = vmatpush.msra.mxu2 %v1825_v1  ;;  %870 = vmatpush.msra.mxu3 %v1856_v24 }
 0x3ef   :  { %851 = vmatpush.msra.mxu2 %v1828_v4  ;;  %871 = vmatpush.msra.mxu3 %v1860_v26 }
 0x3f1   :  { %852 = vmatpush.msra.mxu2 %v1832_v6  ;;  %872 = vmatpush.msra.mxu3 %v1865_v28 }
 0x3f3   :  { %853 = vmatpush.msra.mxu2 %v1836_v8  ;;  %873 = vmatpush.msra.mxu3 %v1870_v30 }
 0x3f5   :  { %854 = vmatpush.msra.mxu2 %v1840_v12  ;;  %874 = vmatpush.msra.mxu3 %v1875_v31 }
 0x3f7   :  { %855 = vmatpush.msra.mxu2 %v1844_v15  ;;  %875 = vmatpush.msra.mxu3 %v1881_v32 }
 0x3f9   :  { %856 = vmatpush.msra.mxu2 %v1848_v18  ;;  %876 = vmatpush.msra.mxu3 %v1887_v33 }
 0x46d   :  { %v441_v40 = vpop.f32.mrf.mxu3  ;;  %v421_v47 = vpop.f32.mrf.mxu2 }
 0x46e   :  { %v447_v43 = vrot.slane %v441_v40, 4  ;;  %v446_v48 = vrot.slane %v421_v47, 4 }
 0x470   :  { %v451_v45 = vadd.f32 %v447_v43, %v1945_v38  ;;  %v450_v49 = vadd.f32 %v446_v48, %v1952_v44 }
 0x472   :  { %1447 = vtanh.f32 %v451_v45  ;;  %v1363_v50 = vmul.f32 -1.442695, %v450_v49  ;;  %v1364_v14 = vmul.f32 -1.442695, %v451_v45 }
 0x474   :  { %1449 = vpow2.f32 %v1363_v50 }
 0x478   :  { %v1448_v46 = vpop.eup %1447 }
 0x479   :  { %496 = vrot.lane.b32.xlu0 %v1448_v46, %s1740_s15 }
 0x47a   :  { %v1450_v51 = vpop.eup %1449 }
 0x47b   :  { %v458_v52 = vadd.f32 1.0, %v1450_v51 }
 0x47d   :  { %1451 = vrcp.f32 %v458_v52  ;;  %v471_v58 = vand.u32 2147483648, %v458_v52  ;;  %vm465_vm3 = vweird.f32 %v458_v52  ;;  %v469_v59 = vand.u32 2147483647, %v458_v52 }
 0x47f   :  { %v472_v61 = vor.u32 1.1754944e-38, %v471_v58  ;;  %vm470_vm5 = vcmp.eq.f32.partialorder %v469_v59, 8.507059e+37 }
 0x483   :  { %v1452_v53 = vpop.eup %1451 }
 0x484   :  { %v461_v54 = vmul.f32 %v1452_v53, %v458_v52  ;;  %vm466_vm2 = vweird.f32 %v1452_v53 }
 0x485   :  { %vm467_vm4 = vmor %vm465_vm3, %vm466_vm2 }
 0x486   :  { %v462_v55 = vsub.f32 1.0, %v461_v54 }
 0x488   :  { %v463_v56 = vmul.f32 %v1452_v53, %v462_v55 }
 0x48a   :  { %v464_v57 = vadd.f32 %v1452_v53, %v463_v56 }
 0x48c   :  { %v468_v60 = vsel %vm467_vm4, %v1452_v53, %v464_v57 }
 0x48d   :  { %v473_v63 = vsel %vm470_vm5, %v472_v61, %v468_v60 }
 0x48e   :  { %v494_v9 = vmul.f32 %v492_v7, %v473_v63 }
 0x4eb   :  { %v497_v62 = vpop.permute.xlu0 %496 }
 0x4ec   :  { %v499_v3 = vmul.f32 %v497_v62, %v473_v63 }
 0x4ee   :  { %501 = vrot.lane.b32.xlu1 %v499_v3, %s1740_s15 }
 0x560   :  { %v502_v10 = vpop.permute.xlu1 %501 }
 0x561   :  { %v2023_v11 = vadd.f32 %v502_v10, %v494_v9 }
 0x563   :  { %1453 = vtanh.f32 %v2023_v11  ;;  %v603_v51 = vrot.slane %v2023_v11, 6 }
 0x564   :  { %1455 = vpow2.f32 %v1364_v14 }
 0x569   :  { %v1454_v13 = vpop.eup %1453 }
 0x56a   :  { %507 = vrot.lane.b32.xlu2 %v1454_v13, %s1740_s15  ;;  %v1456_v16 = vpop.eup %1455 }
 0x56b   :  { %v459_v17 = vadd.f32 1.0, %v1456_v16 }
 0x56d   :  { %1457 = vrcp.f32 %v459_v17  ;;  %v486_v5 = vand.u32 2147483648, %v459_v17  ;;  %vm480_vm7 = vweird.f32 %v459_v17  ;;  %v484_v25 = vand.u32 2147483647, %v459_v17 }
 0x56f   :  { %v487_v39 = vor.u32 1.1754944e-38, %v486_v5  ;;  %vm485_vm9 = vcmp.eq.f32.partialorder %v484_v25, 8.507059e+37 }
 0x573   :  { %v1458_v19 = vpop.eup %1457 }
 0x574   :  { %v476_v2 = vmul.f32 %v1458_v19, %v459_v17  ;;  %vm481_vm6 = vweird.f32 %v1458_v19  ;;  %v2066_v17 = vadd.f32 %v1984_v29, %v117_v36 }
 0x575   :  { %vm482_vm8 = vmor %vm480_vm7, %vm481_vm6 }
 0x576   :  { %v477_v20 = vsub.f32 1.0, %v476_v2 }
 0x578   :  { %v478_v22 = vmul.f32 %v1458_v19, %v477_v20 }
 0x57a   :  { %v479_v23 = vadd.f32 %v1458_v19, %v478_v22 }
 0x57c   :  { %v483_v35 = vsel %vm482_vm8, %v1458_v19, %v479_v23  ;;  %v2073_v23 = vadd.f32 %v1988_v41, %v116_v42 }
 0x57d   :  { %v488_v40 = vsel %vm485_vm9, %v487_v39, %v483_v35 }
 0x5c4   :  { %v508_v43 = vpop.permute.xlu2 %507 }
 0x5c5   :  { %v2027_v45 = vmul.f32 %v508_v43, %v488_v40 }
 0x5c7   :  { %v512_v46 = vrot.slane %v2027_v45, 4 }
 0x5c9   :  { %1365 = vmatmul.msk.f32.vlgmr.msra.gmra.mxu0 %vm120_vm0, %v512_v46  ;;  %1366 = vmatmul.msk.f32.vlgmr.msra.gmra.mxu1 %vm120_vm0, %v512_v46 }
 0x5ca   :  { %960 = vmatpush.msra.mxu0 %v1823_v0  ;;  %980 = vmatpush.msra.mxu1 %v1852_v21 }
 0x5cc   :  { %961 = vmatpush.msra.mxu0 %v1825_v1  ;;  %981 = vmatpush.msra.mxu1 %v1856_v24 }
 0x5ce   :  { %962 = vmatpush.msra.mxu0 %v1828_v4  ;;  %982 = vmatpush.msra.mxu1 %v1860_v26 }
 0x5d0   :  { %963 = vmatpush.msra.mxu0 %v1832_v6  ;;  %983 = vmatpush.msra.mxu1 %v1865_v28 }
 0x5d2   :  { %964 = vmatpush.msra.mxu0 %v1836_v8  ;;  %984 = vmatpush.msra.mxu1 %v1870_v30 }
 0x5d4   :  { %965 = vmatpush.msra.mxu0 %v1840_v12  ;;  %985 = vmatpush.msra.mxu1 %v1875_v31 }
 0x5d6   :  { %966 = vmatpush.msra.mxu0 %v1844_v15  ;;  %986 = vmatpush.msra.mxu1 %v1881_v32 }
 0x5d8   :  { %967 = vmatpush.msra.mxu0 %v1848_v18  ;;  %987 = vmatpush.msra.mxu1 %v1887_v33 }
 0x646   :  { %v552_v0 = vpop.f32.mrf.mxu1  ;;  %v532_v8 = vpop.f32.mrf.mxu0 }
 0x647   :  { %v558_v1 = vrot.slane %v552_v0, 2  ;;  %v557_v12 = vrot.slane %v532_v8, 2 }
 0x649   :  { %v562_v4 = vadd.f32 %v558_v1, %v1945_v38  ;;  %v561_v21 = vadd.f32 %v557_v12, %v1952_v44 }
 0x64b   :  { %1459 = vtanh.f32 %v562_v4  ;;  %v1367_v24 = vmul.f32 -1.442695, %v561_v21  ;;  %v1368_v56 = vmul.f32 -1.442695, %v562_v4 }
 0x64d   :  { %1461 = vpow2.f32 %v1367_v24 }
 0x651   :  { %v1460_v6 = vpop.eup %1459 }
 0x652   :  { %607 = vrot.lane.b32.xlu0 %v1460_v6, %s1740_s15 }
 0x653   :  { %v1462_v15 = vpop.eup %1461 }
 0x654   :  { %v569_v26 = vadd.f32 1.0, %v1462_v15 }
 0x656   :  { %1463 = vrcp.f32 %v569_v26  ;;  %v582_v33 = vand.u32 2147483648, %v569_v26  ;;  %vm576_vm11 = vweird.f32 %v569_v26  ;;  %v580_v38 = vand.u32 2147483647, %v569_v26 }
 0x658   :  { %v583_v48 = vor.u32 1.1754944e-38, %v582_v33  ;;  %vm581_vm13 = vcmp.eq.f32.partialorder %v580_v38, 8.507059e+37 }
 0x65c   :  { %v1464_v18 = vpop.eup %1463 }
 0x65d   :  { %v572_v28 = vmul.f32 %v1464_v18, %v569_v26  ;;  %vm577_vm10 = vweird.f32 %v1464_v18 }
 0x65e   :  { %vm578_vm12 = vmor %vm576_vm11, %vm577_vm10 }
 0x65f   :  { %v573_v30 = vsub.f32 1.0, %v572_v28 }
 0x661   :  { %v574_v31 = vmul.f32 %v1464_v18, %v573_v30 }
 0x663   :  { %v575_v32 = vadd.f32 %v1464_v18, %v574_v31 }
 0x665   :  { %v579_v47 = vsel %vm578_vm12, %v1464_v18, %v575_v32 }
 0x666   :  { %v584_v44 = vsel %vm581_vm13, %v583_v48, %v579_v47 }
 0x667   :  { %v605_v52 = vmul.f32 %v603_v51, %v584_v44 }
 0x6c4   :  { %v608_v49 = vpop.permute.xlu0 %607 }
 0x6c5   :  { %v610_v50 = vmul.f32 %v608_v49, %v584_v44 }
 0x6c7   :  { %612 = vrot.lane.b32.xlu1 %v610_v50, %s1740_s15 }
 0x739   :  { %v613_v53 = vpop.permute.xlu1 %612 }
 0x73a   :  { %v615_v54 = vadd.f32 %v613_v53, %v605_v52 }
 0x73c   :  { %1465 = vtanh.f32 %v615_v54  ;;  %v708_v8 = vrot.slane %v615_v54, 6 }
 0x73d   :  { %1467 = vpow2.f32 %v1368_v56 }
 0x742   :  { %v1466_v55 = vpop.eup %1465 }
 0x743   :  { %618 = vrot.lane.b32.xlu2 %v1466_v55, %s1740_s15  ;;  %v1468_v57 = vpop.eup %1467 }
 0x744   :  { %v570_v58 = vadd.f32 1.0, %v1468_v57 }
 0x746   :  { %1469 = vrcp.f32 %v570_v58  ;;  %v597_v3 = vand.u32 2147483648, %v570_v58  ;;  %vm591_vm15 = vweird.f32 %v570_v58  ;;  %v595_v7 = vand.u32 2147483647, %v570_v58 }
 0x748   :  { %v598_v10 = vor.u32 1.1754944e-38, %v597_v3  ;;  %vm596_vm2 = vcmp.eq.f32.partialorder %v595_v7, 8.507059e+37 }
 0x74c   :  { %v1470_v59 = vpop.eup %1469 }
 0x74d   :  { %v587_v60 = vmul.f32 %v1470_v59, %v570_v58  ;;  %vm592_vm14 = vweird.f32 %v1470_v59 }
 0x74e   :  { %vm593_vm1 = vmor %vm591_vm15, %vm592_vm14 }
 0x74f   :  { %v588_v61 = vsub.f32 1.0, %v587_v60 }
 0x751   :  { %v589_v62 = vmul.f32 %v1470_v59, %v588_v61 }
 0x753   :  { %v590_v63 = vadd.f32 %v1470_v59, %v589_v62 }
 0x755   :  { %v594_v9 = vsel %vm593_vm1, %v1470_v59, %v590_v63 }
 0x756   :  { %v599_v11 = vsel %vm596_vm2, %v598_v10, %v594_v9 }
 0x79d   :  { %v619_v13 = vpop.permute.xlu2 %618 }
 0x79e   :  { %v2054_v14 = vmul.f32 %v619_v13, %v599_v11 }
 0x7a0   :  { %v2057_v16 = vrot.slane %v2054_v14, 6 }
 0x7a2   :  { %1369 = vmatmul.msk.f32.vlgmr.msrb.gmra.mxu2 %vm120_vm0, %v2057_v16  ;;  %1370 = vmatmul.msk.f32.vlgmr.msrb.gmra.mxu3 %vm120_vm0, %v2057_v16 }
 0x825   :  { %v663_v19 = vpop.f32.mrf.mxu3  ;;  %v643_v22 = vpop.f32.mrf.mxu2 }
 0x826   :  { %v667_v2 = vadd.f32 %v663_v19, %v2066_v17  ;;  %v666_v5 = vadd.f32 %v643_v22, %v2073_v23 }
 0x828   :  { %1471 = vtanh.f32 %v667_v2  ;;  %v1371_v25 = vmul.f32 -1.442695, %v666_v5  ;;  %v1372_v26 = vmul.f32 -1.442695, %v667_v2 }
 0x82a   :  { %1473 = vpow2.f32 %v1371_v25 }
 0x82e   :  { %v1472_v20 = vpop.eup %1471 }
 0x82f   :  { %712 = vrot.lane.b32.xlu0 %v1472_v20, %s1740_s15 }
 0x830   :  { %v1474_v35 = vpop.eup %1473 }
 0x831   :  { %v674_v36 = vadd.f32 1.0, %v1474_v35 }
 0x833   :  { %1475 = vrcp.f32 %v674_v36  ;;  %v687_v0 = vand.u32 2147483648, %v674_v36  ;;  %vm681_vm4 = vweird.f32 %v674_v36  ;;  %v685_v1 = vand.u32 2147483647, %v674_v36 }
 0x835   :  { %v688_v42 = vor.u32 1.1754944e-38, %v687_v0  ;;  %vm686_vm6 = vcmp.eq.f32.partialorder %v685_v1, 8.507059e+37 }
 0x839   :  { %v1476_v29 = vpop.eup %1475 }
 0x83a   :  { %v677_v39 = vmul.f32 %v1476_v29, %v674_v36  ;;  %vm682_vm3 = vweird.f32 %v1476_v29 }
 0x83b   :  { %vm683_vm5 = vmor %vm681_vm4, %vm682_vm3 }
 0x83c   :  { %v678_v40 = vsub.f32 1.0, %v677_v39 }
 0x83e   :  { %v679_v43 = vmul.f32 %v1476_v29, %v678_v40 }
 0x840   :  { %v680_v46 = vadd.f32 %v1476_v29, %v679_v43 }
 0x842   :  { %v684_v34 = vsel %vm683_vm5, %v1476_v29, %v680_v46 }
 0x843   :  { %v689_v4 = vsel %vm686_vm6, %v688_v42, %v684_v34 }
 0x844   :  { %v710_v12 = vmul.f32 %v708_v8, %v689_v4 }
 0x8a1   :  { %v713_v41 = vpop.permute.xlu0 %712 }
 0x8a2   :  { %v715_v6 = vmul.f32 %v713_v41, %v689_v4 }
 0x8a4   :  { %717 = vrot.lane.b32.xlu1 %v715_v6, %s1740_s15 }
 0x916   :  { %v718_v21 = vpop.permute.xlu1 %717 }
 0x917   :  { %v720_v24 = vadd.f32 %v718_v21, %v710_v12 }
 0x919   :  { %1477 = vtanh.f32 %v720_v24  ;;  %v818_v25 = vrot.slane %v720_v24, 6 }
 0x91a   :  { %1479 = vpow2.f32 %v1372_v26 }
 0x91f   :  { %v1478_v15 = vpop.eup %1477 }
 0x920   :  { %723 = vrot.lane.b32.xlu2 %v1478_v15, %s1740_s15  ;;  %v1480_v18 = vpop.eup %1479 }
 0x921   :  { %v675_v28 = vadd.f32 1.0, %v1480_v18 }
 0x923   :  { %1481 = vrcp.f32 %v675_v28  ;;  %v702_v47 = vand.u32 2147483648, %v675_v28  ;;  %vm696_vm8 = vweird.f32 %v675_v28  ;;  %v700_v48 = vand.u32 2147483647, %v675_v28 }
 0x925   :  { %v703_v44 = vor.u32 1.1754944e-38, %v702_v47  ;;  %vm701_vm10 = vcmp.eq.f32.partialorder %v700_v48, 8.507059e+37 }
 0x929   :  { %v1482_v30 = vpop.eup %1481 }
 0x92a   :  { %v692_v31 = vmul.f32 %v1482_v30, %v675_v28  ;;  %vm697_vm7 = vweird.f32 %v1482_v30 }
 0x92b   :  { %vm698_vm9 = vmor %vm696_vm8, %vm697_vm7 }
 0x92c   :  { %v693_v32 = vsub.f32 1.0, %v692_v31 }
 0x92e   :  { %v694_v33 = vmul.f32 %v1482_v30, %v693_v32 }
 0x930   :  { %v695_v38 = vadd.f32 %v1482_v30, %v694_v33 }
 0x932   :  { %v699_v49 = vsel %vm698_vm9, %v1482_v30, %v695_v38 }
 0x933   :  { %v704_v50 = vsel %vm701_vm10, %v703_v44, %v699_v49 }
 0x97a   :  { %v724_v51 = vpop.permute.xlu2 %723 }
 0x97b   :  { %v2078_v52 = vmul.f32 %v724_v51, %v704_v50 }
 0x97d   :  { %1373 = vmatmul.msk.f32.vlgmr.msrb.gmra.mxu0 %vm120_vm0, %v2078_v52  ;;  %1374 = vmatmul.msk.f32.vlgmr.msrb.gmra.mxu1 %vm120_vm0, %v2078_v52 }
 0x9fa   :  { %v767_v53 = vpop.f32.mrf.mxu1  ;;  %v747_v57 = vpop.f32.mrf.mxu0 }
 0x9fb   :  { %v773_v54 = vrot.slane %v767_v53, 6  ;;  %v772_v58 = vrot.slane %v747_v57, 6 }
 0x9fd   :  { %v777_v55 = vadd.f32 %v773_v54, %v2066_v17  ;;  %v776_v59 = vadd.f32 %v772_v58, %v2073_v23 }
 0x9ff   :  { %1483 = vtanh.f32 %v777_v55  ;;  %v1375_v60 = vmul.f32 -1.442695, %v776_v59  ;;  %v1376_v40 = vmul.f32 -1.442695, %v777_v55 }
 0xa01   :  { %1485 = vpow2.f32 %v1375_v60 }
 0xa05   :  { %v1484_v56 = vpop.eup %1483 }
 0xa06   :  { %822 = vrot.lane.b32.xlu0 %v1484_v56, %s1740_s15 }
 0xa07   :  { %v1486_v61 = vpop.eup %1485 }
 0xa08   :  { %v784_v62 = vadd.f32 1.0, %v1486_v61 }
 0xa0a   :  { %1487 = vrcp.f32 %v784_v62  ;;  %v797_v11 = vand.u32 2147483648, %v784_v62  ;;  %vm791_vm12 = vweird.f32 %v784_v62  ;;  %v795_v13 = vand.u32 2147483647, %v784_v62 }
 0xa0c   :  { %v798_v2 = vor.u32 1.1754944e-38, %v797_v11  ;;  %vm796_vm14 = vcmp.eq.f32.partialorder %v795_v13, 8.507059e+37 }
 0xa10   :  { %v1488_v63 = vpop.eup %1487 }
 0xa11   :  { %v787_v3 = vmul.f32 %v1488_v63, %v784_v62  ;;  %vm792_vm11 = vweird.f32 %v1488_v63 }
 0xa12   :  { %vm793_vm13 = vmor %vm791_vm12, %vm792_vm11 }
 0xa13   :  { %v788_v7 = vsub.f32 1.0, %v787_v3 }
 0xa15   :  { %v789_v9 = vmul.f32 %v1488_v63, %v788_v7 }
 0xa17   :  { %v790_v10 = vadd.f32 %v1488_v63, %v789_v9 }
 0xa19   :  { %v794_v19 = vsel %vm793_vm13, %v1488_v63, %v790_v10 }
 0xa1a   :  { %v799_v22 = vsel %vm796_vm14, %v798_v2, %v794_v19 }
 0xa1b   :  { %v820_v35 = vmul.f32 %v818_v25, %v799_v22 }
 0xa78   :  { %v823_v20 = vpop.permute.xlu0 %822 }
 0xa79   :  { %v825_v5 = vmul.f32 %v823_v20, %v799_v22 }
 0xa7b   :  { %827 = vrot.lane.b32.xlu1 %v825_v5, %s1740_s15 }
 0xaed   :  { %v828_v36 = vpop.permute.xlu1 %827 }
 0xaee   :  { %v830_v29 = vadd.f32 %v828_v36, %v820_v35 }
 0xaf0   :  { %1489 = vtanh.f32 %v830_v29  ;;  %v929_v62 = vrot.slane %v830_v29, 6 }
 0xaf1   :  { %1491 = vpow2.f32 %v1376_v40 }
 0xaf6   :  { %v1490_v39 = vpop.eup %1489 }
 0xaf7   :  { %833 = vrot.lane.b32.xlu2 %v1490_v39, %s1740_s15  ;;  %v1492_v43 = vpop.eup %1491 }
 0xaf8   :  { %v785_v46 = vadd.f32 1.0, %v1492_v43 }
 0xafa   :  { %1493 = vrcp.f32 %v785_v46  ;;  %v812_v4 = vand.u32 2147483648, %v785_v46  ;;  %vm806_vm1 = vweird.f32 %v785_v46  ;;  %v810_v6 = vand.u32 2147483647, %v785_v46 }
 0xafc   :  { %v813_v12 = vor.u32 1.1754944e-38, %v812_v4  ;;  %vm811_vm3 = vcmp.eq.f32.partialorder %v810_v6, 8.507059e+37 }
 0xb00   :  { %v1494_v0 = vpop.eup %1493 }
 0xb01   :  { %v802_v1 = vmul.f32 %v1494_v0, %v785_v46  ;;  %vm807_vm15 = vweird.f32 %v1494_v0 }
 0xb02   :  { %vm808_vm2 = vmor %vm806_vm1, %vm807_vm15 }
 0xb03   :  { %v803_v34 = vsub.f32 1.0, %v802_v1 }
 0xb05   :  { %v804_v42 = vmul.f32 %v1494_v0, %v803_v34 }
 0xb07   :  { %v805_v41 = vadd.f32 %v1494_v0, %v804_v42 }
 0xb09   :  { %v809_v8 = vsel %vm808_vm2, %v1494_v0, %v805_v41 }
 0xb0a   :  { %v814_v21 = vsel %vm811_vm3, %v813_v12, %v809_v8 }
 0xb51   :  { %v834_v24 = vpop.permute.xlu2 %833 }
 0xb52   :  { %v2089_v15 = vmul.f32 %v834_v24, %v814_v21 }
 0xb54   :  { %v838_v26 = vrot.slane %v2089_v15, 2 }
 0xb56   :  { %1377 = vmatmul.msk.f32.vlgmr.msra.gmra.mxu2 %vm120_vm0, %v838_v26  ;;  %1378 = vmatmul.msk.f32.vlgmr.msra.gmra.mxu3 %vm120_vm0, %v838_v26 }
 0xbd9   :  { %v878_v18 = vpop.f32.mrf.mxu3  ;;  %v858_v32 = vpop.f32.mrf.mxu2 }
 0xbda   :  { %v884_v28 = vrot.slane %v878_v18, 4  ;;  %v883_v33 = vrot.slane %v858_v32, 4 }
 0xbdc   :  { %v888_v30 = vadd.f32 %v884_v28, %v2066_v17  ;;  %v887_v38 = vadd.f32 %v883_v33, %v2073_v23 }
 0xbde   :  { %1495 = vtanh.f32 %v888_v30  ;;  %v1379_v47 = vmul.f32 -1.442695, %v887_v38  ;;  %v1380_v10 = vmul.f32 -1.442695, %v888_v30 }
 0xbe0   :  { %1497 = vpow2.f32 %v1379_v47 }
 0xbe4   :  { %v1496_v31 = vpop.eup %1495 }
 0xbe5   :  { %933 = vrot.lane.b32.xlu0 %v1496_v31, %s1740_s15 }
 0xbe6   :  { %v1498_v48 = vpop.eup %1497 }
 0xbe7   :  { %v895_v49 = vadd.f32 1.0, %v1498_v48  ;;  %v1117_v48 = vld [vmem:[#allocation8 + $0x38] sm:$0xff] }
 0xbe8   :  { %1136 = vmatpush.msrb.mxu2 %v1117_v48 }
 0xbe9   :  { %1499 = vrcp.f32 %v895_v49  ;;  %v908_v55 = vand.u32 2147483648, %v895_v49  ;;  %vm902_vm5 = vweird.f32 %v895_v49  ;;  %v906_v56 = vand.u32 2147483647, %v895_v49 }
 0xbeb   :  { %v909_v58 = vor.u32 1.1754944e-38, %v908_v55  ;;  %vm907_vm7 = vcmp.eq.f32.partialorder %v906_v56, 8.507059e+37 }
 0xbef   :  { %v1500_v44 = vpop.eup %1499 }
 0xbf0   :  { %v898_v50 = vmul.f32 %v1500_v44, %v895_v49  ;;  %vm903_vm4 = vweird.f32 %v1500_v44  ;;  %v1116_v49 = vld [vmem:[#allocation8 + $0x30] sm:$0xff] }
 0xbf1   :  { %vm904_vm6 = vmor %vm902_vm5, %vm903_vm4  ;;  %1137 = vmatpush.msrb.mxu2 %v1116_v49  ;;  %vm1059_vm5 = vcmask 261126  }
 0xbf2   :  { %v899_v51 = vsub.f32 1.0, %v898_v50  ;;  %v1114_v50 = vld [vmem:[#allocation8 + $0x20] sm:$0xff] }
 0xbf4   :  { %v900_v53 = vmul.f32 %v1500_v44, %v899_v51 }
 0xbf6   :  { %v901_v54 = vadd.f32 %v1500_v44, %v900_v53 }
 0xbf8   :  { %v905_v57 = vsel %vm904_vm6, %v1500_v44, %v901_v54  ;;  %v1115_v44 = vld [vmem:[#allocation8 + $0x28] sm:$0xff]  ;;  %vm1079_vm6 = vcmask 261120  }
 0xbf9   :  { %v910_v60 = vsel %vm907_vm7, %v909_v58, %v905_v57  ;;  %1138 = vmatpush.msrb.mxu2 %v1115_v44  ;;  %vm1101_vm7 = vcmask 1041408  }
 0xbfa   :  { %v931_v63 = vmul.f32 %v929_v62, %v910_v60  ;;  %v1111_v62 = vld [vmem:[#allocation8 + $0x8] sm:$0xff] }
 0xbfb   :  { %1139 = vmatpush.msrb.mxu2 %v1114_v50 }
 0xc57   :  { %v934_v59 = vpop.permute.xlu0 %933 }
 0xc58   :  { %v936_v61 = vmul.f32 %v934_v59, %v910_v60  ;;  %v1113_v60 = vld [vmem:[#allocation8 + $0x18] sm:$0xff] }
 0xc59   :  { %1140 = vmatpush.msrb.mxu2 %v1113_v60 }
 0xc5a   :  { %938 = vrot.lane.b32.xlu1 %v936_v61, %s1740_s15  ;;  %v1112_v61 = vld [vmem:[#allocation8 + $0x10] sm:$0xff] }
 0xc5b   :  { %1141 = vmatpush.msrb.mxu2 %v1112_v61 }
 0xc5d   :  { %1142 = vmatpush.msrb.mxu2 %v1111_v62 }
 0xccc   :  { %v939_v3 = vpop.permute.xlu1 %938 }
 0xccd   :  { %v2098_v7 = vadd.f32 %v939_v3, %v931_v63  ;;  %v1110_v63 = vld [vmem:[#allocation8] sm:$0xff] }
 0xcce   :  { %1143 = vmatpush.msrb.mxu2 %v1110_v63 }
 0xccf   :  { %1501 = vtanh.f32 %v2098_v7  ;;  %v1040_v51 = vrot.slane %v2098_v7, 6 }
 0xcd0   :  { %1503 = vpow2.f32 %v1380_v10 }
 0xcd5   :  { %v1502_v9 = vpop.eup %1501 }
 0xcd6   :  { %944 = vrot.lane.b32.xlu2 %v1502_v9, %s1740_s15  ;;  %v1504_v11 = vpop.eup %1503 }
 0xcd7   :  { %v896_v13 = vadd.f32 1.0, %v1504_v11 }
 0xcd9   :  { %1505 = vrcp.f32 %v896_v13  ;;  %v923_v25 = vand.u32 2147483648, %v896_v13  ;;  %vm917_vm9 = vweird.f32 %v896_v13  ;;  %v921_v35 = vand.u32 2147483647, %v896_v13 }
 0xcdb   :  { %v924_v29 = vor.u32 1.1754944e-38, %v923_v25  ;;  %vm922_vm11 = vcmp.eq.f32.partialorder %v921_v35, 8.507059e+37 }
 0xcdf   :  { %v1506_v19 = vpop.eup %1505 }
 0xce0   :  { %v913_v2 = vmul.f32 %v1506_v19, %v896_v13  ;;  %vm918_vm8 = vweird.f32 %v1506_v19 }
 0xce1   :  { %vm919_vm10 = vmor %vm917_vm9, %vm918_vm8  ;;  %vm1103_vm8 = vcmask 1043456   ;;  %vm1105_vm9 = vcmask 1045504  }
 0xce2   :  { %v914_v20 = vsub.f32 1.0, %v913_v2 }
 0xce4   :  { %v915_v22 = vmul.f32 %v1506_v19, %v914_v20 }
 0xce6   :  { %v916_v5 = vadd.f32 %v1506_v19, %v915_v22 }
 0xce8   :  { %v920_v36 = vsel %vm919_vm10, %v1506_v19, %v916_v5  ;;  %vm1179_vm10 = vcmask 7168  }
 0xce9   :  { %v925_v39 = vsel %vm922_vm11, %v924_v29, %v920_v36  ;;  %v1084_v36 = vrot.slane %v2089_v15, 6  ;;  %v1087_v29 = vrot.slane %v2078_v52, 2  ;;  %vm1181_vm11 = vcmask 15360  }
 0xd30   :  { %v945_v40 = vpop.permute.xlu2 %944 }
 0xd31   :  { %v2102_v43 = vmul.f32 %v945_v40, %v925_v39 }
 0xd33   :  { %v949_v46 = vrot.slane %v2102_v43, 4  ;;  %v1081_v25 = vrot.slane %v2102_v43, 2 }
 0xd35   :  { %1381 = vmatmul.msk.f32.vlgmr.msra.gmra.mxu0 %vm120_vm0, %v949_v46  ;;  %1382 = vmatmul.msk.f32.vlgmr.msra.gmra.mxu1 %vm120_vm0, %v949_v46  ;;  %v2122_v40 = vsel %vm1079_vm6, %v1997_v37, %v1081_v25  ;;  %v1746_v25 = vmov 5  }
 0xdb2   :  { %v989_v0 = vpop.f32.mrf.mxu1  ;;  %v969_v41 = vpop.f32.mrf.mxu0 }
 0xdb3   :  { %v995_v1 = vrot.slane %v989_v0, 2  ;;  %v994_v4 = vrot.slane %v969_v41, 2  ;;  %v2130_v0 = vsel %vm1079_vm6, %v2027_v45, %v1084_v36  ;;  %v1751_v36 = vmov 7  }
 0xdb5   :  { %v999_v34 = vadd.f32 %v995_v1, %v2066_v17  ;;  %v998_v6 = vadd.f32 %v994_v4, %v2073_v23  ;;  %v1092_v4 = vrot.slane %v2027_v45, 2 }
 0xdb7   :  { %1507 = vtanh.f32 %v999_v34  ;;  %v1383_v8 = vmul.f32 -1.442695, %v998_v6  ;;  %v1384_v57 = vmul.f32 -1.442695, %v999_v34  ;;  %v2137_v34 = vsel %vm1079_vm6, %v2054_v14, %v1087_v29 }
 0xdb8   :  { %v1095_v6 = vrot.slane %v1997_v37, 6  ;;  %v1752_v29 = vmov 4  }
 0xdb9   :  { %1509 = vpow2.f32 %v1383_v8  ;;  %v2146_v8 = vsel %vm1079_vm6, %v2089_v15, %v1092_v4 }
 0xdba   :  { %v2151_v14 = vsel %vm1079_vm6, %v2102_v43, %v1095_v6  ;;  %v1421_v43 = vld [vmem:[%s2216_s5] ss:$0 sm:$0xff]  ;;  %s1741_s5 = smov 96  }
 0xdbd   :  { %v1508_v42 = vpop.eup %1507 }
 0xdbe   :  { %1044 = vrot.lane.b32.xlu0 %v1508_v42, %s1740_s15 }
 0xdbf   :  { %v1510_v12 = vpop.eup %1509 }
 0xdc0   :  { %v1006_v21 = vadd.f32 1.0, %v1510_v12  ;;  %v1098_v12 = vrot.slane %v1962_v27, 2 }
 0xdc2   :  { %1511 = vrcp.f32 %v1006_v21  ;;  %v1019_v17 = vand.u32 2147483648, %v1006_v21  ;;  %vm1013_vm13 = vweird.f32 %v1006_v21  ;;  %v1017_v31 = vand.u32 2147483647, %v1006_v21 }
 0xdc4   :  { %v1020_v33 = vor.u32 1.1754944e-38, %v1019_v17  ;;  %vm1018_vm15 = vcmp.eq.f32.partialorder %v1017_v31, 8.507059e+37 }
 0xdc8   :  { %v1512_v24 = vpop.eup %1511 }
 0xdc9   :  { %v1009_v26 = vmul.f32 %v1512_v24, %v1006_v21  ;;  %vm1014_vm12 = vweird.f32 %v1512_v24  ;;  %v2156_v21 = vsel %vm1079_vm6, %v2078_v52, %v2057_v16  ;;  %v1422_v52 = vld [vmem:[%s2217_s6] ss:$0 sm:$0xff]  ;;  %s1748_s6 = smov [#allocation11]  }
 0xdca   :  { %vm1015_vm14 = vmor %vm1013_vm13, %vm1014_vm12  ;;  %v1107_v37 = vsel %vm1101_vm7, %v2156_v21, %v2146_v8  ;;  %vm1183_vm12 = vcmask 23552   ;;  %vm1185_vm13 = vcmask 31744   ;;  %s1296_s19 = sshll.u32 %s1748_s6, 4  ;;  %s1297_s19 = int_to_ptr.vmem [resolvable:$true] %s1296_s19 }
 0xdcb   :  { %v1010_v18 = vsub.f32 1.0, %v1009_v26  ;;  %v1108_v15 = vsel %vm1103_vm8, %v1107_v37, %v2151_v14 }
 0xdcd   :  { %v1011_v28 = vmul.f32 %v1512_v24, %v1010_v18 }
 0xdcf   :  { %v1012_v30 = vadd.f32 %v1512_v24, %v1011_v28 }
 0xdd1   :  { %v1016_v32 = vsel %vm1015_vm14, %v1512_v24, %v1012_v30  ;;  %vm1187_vm14 = vcmask 39936  }
 0xdd2   :  { %v1021_v23 = vsel %vm1018_vm15, %v1020_v33, %v1016_v32  ;;  %vm1191_vm15 = vcmask 56320  }
 0xdd3   :  { %v1042_v53 = vmul.f32 %v1040_v51, %v1021_v23 }
 0xe30   :  { %v1045_v38 = vpop.permute.xlu0 %1044 }
 0xe31   :  { %v1047_v47 = vmul.f32 %v1045_v38, %v1021_v23 }
 0xe33   :  { %1049 = vrot.lane.b32.xlu1 %v1047_v47, %s1740_s15 }
 0xea5   :  { %v1050_v54 = vpop.permute.xlu1 %1049 }
 0xea6   :  { %v2112_v55 = vadd.f32 %v1050_v54, %v1042_v53 }
 0xea8   :  { %1513 = vtanh.f32 %v2112_v55 }
 0xea9   :  { %1515 = vpow2.f32 %v1384_v57 }
 0xeae   :  { %v1514_v56 = vpop.eup %1513 }
 0xeaf   :  { %1055 = vrot.lane.b32.xlu2 %v1514_v56, %s1740_s15  ;;  %v1516_v58 = vpop.eup %1515 }
 0xeb0   :  { %v1007_v59 = vadd.f32 1.0, %v1516_v58 }
 0xeb2   :  { %1517 = vrcp.f32 %v1007_v59  ;;  %v1034_v13 = vand.u32 2147483648, %v1007_v59  ;;  %vm1028_vm2 = vweird.f32 %v1007_v59  ;;  %v1032_v19 = vand.u32 2147483647, %v1007_v59 }
 0xeb4   :  { %v1035_v20 = vor.u32 1.1754944e-38, %v1034_v13  ;;  %vm1033_vm4 = vcmp.eq.f32.partialorder %v1032_v19, 8.507059e+37  ;;  %v1743_v13 = vmov 1   ;;  %v1744_v19 = vmov 0  }
 0xeb5   :  { %1412 = vset.pattern.permute.xlu1 %v1743_v13  ;;  %1414 = vset.pattern.permute.xlu0 %v1744_v19 }
 0xeb8   :  { %v1518_v3 = vpop.eup %1517 }
 0xeb9   :  { %v1024_v7 = vmul.f32 %v1518_v3, %v1007_v59  ;;  %vm1029_vm1 = vweird.f32 %v1518_v3 }
 0xeba   :  { %vm1030_vm3 = vmor %vm1028_vm2, %vm1029_vm1  ;;  %vm1193_vm1 = vcmask 58368   ;;  %vm1279_vm2 = vcmask 517120  }
 0xebb   :  { %v1025_v9 = vsub.f32 1.0, %v1024_v7 }
 0xebd   :  { %v1026_v10 = vmul.f32 %v1518_v3, %v1025_v9 }
 0xebf   :  { %v1027_v11 = vadd.f32 %v1518_v3, %v1026_v10 }
 0xec1   :  { %v1031_v2 = vsel %vm1030_vm3, %v1518_v3, %v1027_v11  ;;  %v1742_v11 = vmov 2  }
 0xec2   :  { %v1036_v22 = vsel %vm1033_vm4, %v1035_v20, %v1031_v2  ;;  %1413 = vset.pattern.permute.xlu2 %v1742_v11 }
 0xf09   :  { %v1056_v5 = vpop.permute.xlu2 %1055 }
 0xf0a   :  { %v1058_v35 = vmul.f32 %v1056_v5, %v1036_v22  ;;  %v1745_v5 = vmov 6  }
 0xf0c   :  { %v1077_v39 = vrot.slane %v1058_v35, 6  ;;  %1060 = vst.msk [vmem:[#allocation11 - $0x6] sm:$0xc0] %vm1059_vm5, %v1058_v35  ;;  %v2159_v45 = vsel %vm1079_vm6, %v1058_v35, %v1098_v12 }
 0xf0e   :  { %v2126_v46 = vsel %vm1079_vm6, %v1962_v27, %v1077_v39  ;;  %v1109_v27 = vsel %vm1105_vm9, %v1108_v15, %v2159_v45 }
 0xf0f   :  { %v1102_v1 = vsel %vm1101_vm7, %v2126_v46, %v2122_v40 }
 0xf10   :  { %v1104_v42 = vsel %vm1103_vm8, %v1102_v1, %v2130_v0 }
 0xf11   :  { %v1106_v41 = vsel %vm1105_vm9, %v1104_v42, %v2137_v34 }
 0xf12   :  { %1385 = vmatmul.msk.f32.vlgmr.msrb.gmra.mxu2 %vm120_vm0, %v1106_v41 }
 0xf1a   :  { %1386 = vmatmul.msk.f32.gmra.mxu2 %vm120_vm0, %v1109_v27 }
 0xf95   :  { %v1145_v24 = vpop.f32.mrf.mxu2 }
 0xf96   :  { %v1146_v16 = vadd.f32 %v1421_v43, %v1145_v24 }
 0xf98   :  { %1519 = vtanh.f32 %v1146_v16 }
 0xf9d   :  { %v1148_v26 = vpop.f32.mrf.mxu2 }
 0xf9e   :  { %v1520_v18 = vpop.eup %1519  ;;  %v1149_v28 = vadd.f32 %v1421_v43, %v1148_v26 }
 0xf9f   :  { %v1157_v30 = vmul.f32 %v1520_v18, %v1422_v52 }
 0xfa0   :  { %1521 = vtanh.f32 %v1149_v28 }
 0xfa1   :  { %v1159_v17 = vsel %vm120_vm0, %v1157_v30, 0.0 }
 0xfa2   :  { %1160 = vadd.xlane.f32.xlu0 %v1159_v17 }
 0xfa6   :  { %v1522_v31 = vpop.eup %1521 }
 0xfa7   :  { %v1158_v32 = vmul.f32 %v1522_v31, %v1422_v52 }
 0xfa9   :  { %v1162_v33 = vsel %vm120_vm0, %v1158_v32, 0.0  ;;  %vm1189_vm0 = vcmask 48128  }
 0xfaa   :  { %1163 = vadd.xlane.f32.xlu1 %v1162_v33 }
 0xfb6   :  { %1062 = vrot.lane.b32.xlu0 %v1058_v35, %s1741_s5  ;;  %v1747_v35 = vmov 3  }
0x1015   :  { %v1161_v38 = vpop.xlane.xlu0 %1160 }
0x1016   :  { %v1166_v23 = vrot.slane %v1161_v38, 2  ;;  %v1168_v47 = vrot.slane %v1161_v38, 4  ;;  %v1170_v44 = vrot.slane %v1161_v38, 6 }
0x1018   :  { %v1180_v48 = vsel %vm1179_vm10, %v1161_v38, %v1166_v23 }
0x1019   :  { %v1182_v49 = vsel %vm1181_vm11, %v1180_v48, %v1168_v47 }
0x101a   :  { %v1184_v51 = vsel %vm1183_vm12, %v1182_v49, %v1170_v44 }
0x101d   :  { %v1164_v50 = vpop.xlane.xlu1 %1163 }
0x101e   :  { %v1173_v53 = vrot.slane %v1164_v50, 2  ;;  %v1175_v54 = vrot.slane %v1164_v50, 4  ;;  %v1186_v56 = vsel %vm1185_vm13, %v1184_v51, %v1164_v50  ;;  %v1177_v57 = vrot.slane %v1164_v50, 6 }
0x1020   :  { %v1188_v58 = vsel %vm1187_vm14, %v1186_v56, %v1173_v53 }
0x1021   :  { %v1190_v59 = vsel %vm1189_vm0, %v1188_v58, %v1175_v54 }
0x1022   :  { %v1192_v60 = vsel %vm1191_vm15, %v1190_v59, %v1177_v57 }
0x1023   :  { %v1194_v61 = vsel %vm1193_vm1, %v1192_v60, -inf }
0x1024   :  { %1195 = vmax.xlane.f32.xlu2 %v1194_v61 }
0x1028   :  { %v1063_v62 = vpop.permute.xlu0 %1062 }
0x1029   :  { %1066 = vst.msk [vmem:[#allocation11 - $0x4] sm:$0xc0] %vm1059_vm5, %v1063_v62 }
0x102a   :  { %1304 = dma.vmem_to_hbm [thread:$0]  %s1297_s19, 64, %s1299_s22, [#allocation12], %s1749_s23, %s1749_s23, %s1750_s24  }
0x1097   :  { %v1196_v63 = vpop.xlane.xlu2 %1195 }
0x1098   :  { %v1197_v3 = vsub.f32 %v1192_v60, %v1196_v63 }
0x109a   :  { %v1198_v7 = vmul.f32 1.442695, %v1197_v3 }
0x109c   :  { %1523 = vpow2.f32 %v1198_v7 }
0x10a2   :  { %v1524_v9 = vpop.eup %1523 }
0x10a3   :  { %v1200_v10 = vsel %vm1193_vm1, %v1524_v9, 0.0 }
0x10a4   :  { %1201 = vadd.xlane.f32.xlu2 %v1200_v10 }
0x1117   :  { %v1202_v2 = vpop.xlane.xlu2 %1201 }
0x1118   :  { %1525 = vrcp.f32 %v1202_v2 }
0x111e   :  { %v1526_v20 = vpop.eup %1525 }
0x111f   :  { %v1204_v22 = vmul.f32 %v1526_v20, %v1524_v9 }
0x1121   :  { %1205 = vst.msk [vmem:[#allocation14] sm:$0x3] %vm1193_vm1, %v1204_v22  ;;  %1208 = vperm.xlu0 %1414, %v1204_v22   ;;  %1224 = vperm.xlu2 %1413, %v1204_v22  }
0x1122   :  { %1214 = vperm.xlu1 %1412, %v1204_v22   ;;  %1328 = dma.vmem_to_hbm [thread:$0]  %s1324_s26, 32, %s1326_s8, [#allocation15]  }
0x1129   :  { %1418 = vset.pattern.permute.xlu0 %v1745_v5  ;;  %1416 = vset.pattern.permute.xlu2 %v1746_v25 }
0x112a   :  { %1415 = vset.pattern.permute.xlu1 %v1747_v35  ;;  %1260 = vperm.xlu0 %1418, %v1204_v22  }
0x112b   :  { %1250 = vperm.xlu2 %1416, %v1204_v22   ;;  %1234 = vperm.xlu1 %1415, %v1204_v22  }
0x1132   :  { %1420 = vset.pattern.permute.xlu0 %v1751_v36 }
0x1133   :  { %1419 = vset.pattern.permute.xlu2 %v1751_v36  ;;  %1417 = vset.pattern.permute.xlu1 %v1752_v29 }
0x1134   :  { %1270 = vperm.xlu2 %1419, %v1204_v22   ;;  %1244 = vperm.xlu1 %1417, %v1204_v22  }
0x113c   :  { %1072 = vrot.lane.b32.xlu2 %v2112_v55, %s1749_s23  ;;  %1068 = vrot.lane.b32.xlu1 %v2112_v55, %s1740_s15 }
0x117b   :  { %v1225_v39 = vpop.permute.xlu2 %1224 }
0x117c   :  { %v1226_v15 = vrot.slane %v1225_v39, 4 }
0x117e   :  { %v1228_v16 = vmul.f32 %v1226_v15, %v2130_v0 }
0x1180   :  { %v1230_v30 = vrot.slane %v1228_v16, 4 }
0x1185   :  { %v1251_v1 = vpop.permute.xlu2 %1250 }
0x1186   :  { %v1252_v18 = vrot.slane %v1251_v1, 6 }
0x1188   :  { %v1254_v32 = vmul.f32 %v1252_v18, %v2146_v8 }
0x118a   :  { %v1256_v48 = vrot.slane %v1254_v32, 2 }
0x118e   :  { %v1271_v42 = vpop.permute.xlu2 %1270 }
0x118f   :  { %v1272_v33 = vrot.slane %v1271_v42, 2 }
0x1193   :  { %v1209_v6 = vpop.permute.xlu0 %1208 }
0x1194   :  { %v1215_v41 = vpop.permute.xlu1 %1214  ;;  %v1211_v52 = vmul.f32 %v1209_v6, %v2126_v46  ;;  %v1274_v46 = vmul.f32 %v1272_v33, %v2159_v45 }
0x1195   :  { %v1216_v4 = vrot.slane %v1215_v41, 6 }
0x1196   :  { %v1073_v12 = vpop.permute.xlu2 %1072 }
0x1197   :  { %1076 = vst.msk [vmem:[#allocation13 - $0x4] sm:$0xc0] %vm1059_vm5, %v1073_v12  ;;  %v1218_v37 = vmul.f32 %v1216_v4, %v2122_v40 }
0x1199   :  { %v1220_v27 = vrot.slane %v1218_v37, 2 }
0x119b   :  { %v1222_v28 = vadd.f32 %v1220_v27, %v1211_v52 }
0x119c   :  { %v1261_v26 = vpop.permute.xlu0 %1260 }
0x119d   :  { %v1235_v43 = vpop.permute.xlu1 %1234  ;;  %v1262_v31 = vrot.slane %v1261_v26, 4  ;;  %v1232_v40 = vadd.f32 %v1230_v30, %v1222_v28 }
0x119e   :  { %v1236_v24 = vrot.slane %v1235_v43, 2 }
0x119f   :  { %v1264_v23 = vmul.f32 %v1262_v31, %v2151_v14  ;;  %v1276_v14 = vrot.slane %v1274_v46, 6 }
0x11a0   :  { %v1238_v55 = vmul.f32 %v1236_v24, %v2137_v34 }
0x11a1   :  { %v1266_v49 = vrot.slane %v1264_v23, 4 }
0x11a2   :  { %v1240_v17 = vrot.slane %v1238_v55, 6 }
0x11a4   :  { %v1242_v47 = vadd.f32 %v1240_v17, %v1232_v40 }
0x11a6   :  { %v1245_v38 = vpop.permute.xlu1 %1244 }
0x11a7   :  { %v1247_v0 = vmul.f32 %v1245_v38, %v2156_v21 }
0x11a9   :  { %v1248_v34 = vadd.f32 %v1247_v0, %v1242_v47 }
0x11ab   :  { %v1258_v8 = vadd.f32 %v1256_v48, %v1248_v34 }
0x11ad   :  { %v1268_v21 = vadd.f32 %v1266_v49, %v1258_v8 }
0x11ae   :  { %v1069_v45 = vpop.permute.xlu1 %1068 }
0x11af   :  { %1071 = vst.msk [vmem:[#allocation13 - $0x6] sm:$0xc0] %vm1059_vm5, %v1069_v45  ;;  %v1278_v44 = vadd.f32 %v1276_v14, %v1268_v21 }
0x11b0   :  { %1317 = dma.vmem_to_hbm [thread:$0]  %s1310_s28, 64, %s1312_s11, [#allocation12], %s1749_s23, %s1749_s23, %s1750_s24  }
0x11b1   :  { %1280 = vst.msk [vmem:[#allocation10] sm:$0x3] %vm1279_vm2, %v1278_v44 }
0x11b2   :  { %1291 = dma.vmem_to_hbm [thread:$0]  %s1287_s12, 32, %s1289_s2, [#allocation4]  }
0x11b3   :  { %1725 = dma.done.wait [#allocation4], 32  }
0x11b4   :  { %1726 = vsyncadd [#allocation4], 4294967264 }
0x11b5   :  { %1727 = dma.done.wait [#allocation12], 128  }
0x11b6   :  { %1728 = vsyncadd [#allocation12], 4294967168 }
0x11b7   :  { %1729 = dma.done.wait [#allocation15], 32  }
0x11b8   :  { %1730 = vsyncadd [#allocation15], 4294967264 }
0x11b9   :  { %1345 = vsyncpa [#allocation3], 1 }
0x11ba   :  { %1346 = vsyncpa [#allocation6], 1 }
0x11bb   :  { %1347 = vsyncpa [#allocation9], 1 }
0x11bc   :  { %1348 = vsyncpa [#allocation4], 1 }
0x11bd   :  { %1349 = vsyncpa [#allocation12], 1 }
0x11be   :  { %1350 = vsyncpa [#allocation15], 1 }

</bundles_post_ra>
